<compile_context>
chip_gen: v6e
topology: v6e:2x2x1
jax: 0.10.0
libtpu: 0.0.40
codegen_flags: <defaults>
</compile_context>

<pallas_src>
import math

import jax
import jax.numpy as jnp
from jax.experimental import pallas as pl
from jax.experimental.pallas import tpu as pltpu


# --------------------------------------------------------------------------------------
# Fused kernel
# --------------------------------------------------------------------------------------
def _make_fused_kernel(T, BP, H, num_layers):
    """Fused whole-model kernel for fixed (T, padded batch BP, hidden H, num_layers)."""
    G2, G6, G8 = 2 * H, 6 * H, 8 * H

    def kernel(*refs):
        # refs = x, (w_ih, w_hh, b) * num_layers, fc_w, fc_b, out, gx_sc, seq_sc
        x_ref = refs[0]
        layer_refs = [refs[1 + 3 * l: 1 + 3 * (l + 1)] for l in range(num_layers)]
        fc_w_ref = refs[1 + 3 * num_layers]
        fc_b_ref = refs[2 + 3 * num_layers]
        out_ref = refs[3 + 3 * num_layers]
        gx_sc = refs[4 + 3 * num_layers]      # VMEM (T*BP, 8H): hoisted input projection
        seq_sc = refs[5 + 3 * num_layers]     # VMEM (T*BP, 2H): [fwd | rev] layer outputs

        f32 = jnp.float32

        # Column masks (built once from iota + comparisons; trace-time constants).
        col8 = jax.lax.broadcasted_iota(jnp.int32, (BP, G8), 1)
        fwd_mask = col8 < 0                               # all-False start
        for k in range(4):                                # gate groups: i, f, o, g
            lo = 2 * k * H
            fwd_mask = fwd_mask | ((col8 >= lo) & (col8 < lo + H))
        col2 = jax.lax.broadcasted_iota(jnp.int32, (BP, G2), 1)
        fwd_half = col2 < H                               # forward half of the (BP, 2H) state

        x_cur = x_ref[...].astype(f32)                    # (T*BP, D_in), row t*BP+b = x[b, t, :]
        h_out = None

        for l, (w_ih_ref, w_hh_ref, b_ref) in enumerate(layer_refs):
            is_last = l == num_layers - 1

            # Hoisted input projection: all T steps, both directions, one MXU matmul.
            gx_sc[...] = (jnp.dot(x_cur, w_ih_ref[...], preferred_element_type=f32)
                          + b_ref[...])
            w_hh = w_hh_ref[...]                          # (2H, 8H) per-gate block-diagonal

            h = jnp.zeros((BP, G2), f32)                  # [h_fwd | h_rev]
            c = jnp.zeros((BP, G2), f32)
            h_first = h

            for t in range(T):                            # static unroll: T small & fixed
                tr = T - 1 - t
                # One recurrent MXU push per step for BOTH directions.
                rec = jnp.dot(h, w_hh, preferred_element_type=f32)
                gates = rec + jnp.where(fwd_mask,
                                        gx_sc[t * BP:(t + 1) * BP, :],     # fwd: time t
                                        gx_sc[tr * BP:(tr + 1) * BP, :])   # rev: time T-1-t
                # i/f/o for both directions in one contiguous slab -> one EUP sigmoid.
                sig = 0.5 * jnp.tanh(0.5 * gates[:, 0:G6]) + 0.5
                g = jnp.tanh(gates[:, G6:G8])                              # [g_fwd | g_rev]
                c = sig[:, 2 * H:4 * H] * c + sig[:, 0:2 * H] * g          # f*c + i*g
                h = sig[:, 4 * H:6 * H] * jnp.tanh(c)                      # o*tanh(c)

                if is_last:
                    if t == 0:
                        # reverse half = reverse hidden at sequence position T-1
                        h_first = h
                else:
                    seq_sc[t * BP:(t + 1) * BP, 0:H] = h[:, 0:H]
                    seq_sc[tr * BP:(tr + 1) * BP, H:G2] = h[:, H:G2]

            if is_last:
                # out[:, -1, :] == [h_fwd after step T-1 | h_rev after its first step]
                h_out = jnp.where(fwd_half, h, h_first)
            else:
                x_cur = seq_sc[...]                       # next layer's input, still in VMEM

        # Dropout before the FC is identity in eval/inference mode. One fused matmul.
        out = jnp.dot(h_out, fc_w_ref[...], preferred_element_type=f32) + fc_b_ref[...]
        out_ref[...] = out.astype(out_ref.dtype)

    return kernel


# --------------------------------------------------------------------------------------
# Wrapper
# --------------------------------------------------------------------------------------
def lstm_model_multistep_forward(params, x):
    """x: (B, T, input_size), batch-first like the PyTorch module. Returns (B, forecast_length)."""
    B, T, D = x.shape
    layers = params["layers"]
    H = layers[0]["w_hh"].shape[0] // 2
    F = params["fc_w"].shape[1]
    L = len(layers)

    BP = max(8, ((B + 7) // 8) * 8)                       # pad batch to the 8-sublane granule
    x_p = jnp.pad(x, ((0, BP - B), (0, 0), (0, 0))) if BP != B else x
    # Time-major flattened rows: row t*BP + b = x[b, t, :] (cheap XLA reshape outside kernel).
    x2d = jnp.transpose(x_p, (1, 0, 2)).reshape(T * BP, D)

    flat = [x2d]
    for lp in layers:
        flat += [lp["w_ih"], lp["w_hh"], lp["b"]]
    flat += [params["fc_w"], params["fc_b"]]

    vmem = pltpu.MemorySpace.VMEM
    out = pl.pallas_call(
        _make_fused_kernel(T=T, BP=BP, H=H, num_layers=L),
        out_shape=jax.ShapeDtypeStruct((BP, F), x.dtype),
        in_specs=[pl.BlockSpec(memory_space=vmem) for _ in flat],
        out_specs=pl.BlockSpec(memory_space=vmem),
        scratch_shapes=[pltpu.VMEM((T * BP, 8 * H), jnp.float32),   # gx staging
                        pltpu.VMEM((T * BP, 2 * H), jnp.float32)],  # layer outputs
    )(*flat)
    return out[:B]


# --------------------------------------------------------------------------------------
# PyTorch-layout parameter generation, conversion to kernel layout, and a pure-JAX reference
# --------------------------------------------------------------------------------------
_PT_GATE_ORDER = ("i", "f", "g", "o")        # torch.nn.LSTM row-block order
_KERNEL_GATE_ORDER = ("i", "f", "o", "g")    # sigmoid gates contiguous, tanh gate last


def _split_gates(arr, H):
    """Split a PyTorch (4H, ...) tensor into its i/f/g/o row blocks."""
    return {g: arr[k * H:(k + 1) * H] for k, g in enumerate(_PT_GATE_ORDER)}


def pack_bilstm_layer(lp):
    """Convert one bidirectional PyTorch LSTM layer to the kernel layout.

    PyTorch per direction: w_ih (4H, D_in), w_hh (4H, H), b_ih (4H,), b_hh (4H,).
    Kernel layout, column groups [i_f|i_r | f_f|f_r | o_f|o_r | g_f|g_r]:
      w_ih (D_in, 8H); w_hh (2H, 8H) per-gate block-diagonal (rows 0:H act on h_fwd,
      rows H:2H on h_rev); b (1, 8H) with b_ih + b_hh pre-summed.
    """
    H = lp["w_hh_f"].shape[1]
    zero = jnp.zeros((H, H), jnp.float32)
    ih_f, ih_r = _split_gates(lp["w_ih_f"], H), _split_gates(lp["w_ih_r"], H)
    hh_f, hh_r = _split_gates(lp["w_hh_f"], H), _split_gates(lp["w_hh_r"], H)
    b_f = _split_gates(lp["b_ih_f"] + lp["b_hh_f"], H)
    b_r = _split_gates(lp["b_ih_r"] + lp["b_hh_r"], H)

    w_ih_cols, w_hh_cols, b_cols = [], [], []
    for g in _KERNEL_GATE_ORDER:
        w_ih_cols += [ih_f[g].T, ih_r[g].T]
        w_hh_cols += [jnp.concatenate([hh_f[g].T, zero], axis=0),
                      jnp.concatenate([zero, hh_r[g].T], axis=0)]
        b_cols += [b_f[g], b_r[g]]
    return {"w_ih": jnp.concatenate(w_ih_cols, axis=1),
            "w_hh": jnp.concatenate(w_hh_cols, axis=1),
            "b": jnp.concatenate(b_cols, axis=0).reshape(1, 8 * H)}


def pack_params(pt_params):
    return {"layers": [pack_bilstm_layer(lp) for lp in pt_params["layers"]],
            "fc_w": pt_params["fc_w"].T,                  # (2H, F)
            "fc_b": pt_params["fc_b"].reshape(1, -1)}     # (1, F)


def init_pt_params(key, input_size, hidden_size, num_layers, forecast_length):
    """Random init matching PyTorch's U(-1/sqrt(H), 1/sqrt(H)), in PyTorch layout."""
    H = hidden_size
    k = 1.0 / math.sqrt(H)
    layers = []
    for layer in range(num_layers):
        d_in = input_size if layer == 0 else 2 * H
        lp = {}
        for suf in ("f", "r"):                            # forward, reverse
            key, k1, k2, k3, k4 = jax.random.split(key, 5)
            lp["w_ih_" + suf] = jax.random.uniform(k1, (4 * H, d_in), jnp.float32, -k, k)
            lp["w_hh_" + suf] = jax.random.uniform(k2, (4 * H, H), jnp.float32, -k, k)
            lp["b_ih_" + suf] = jax.random.uniform(k3, (4 * H,), jnp.float32, -k, k)
            lp["b_hh_" + suf] = jax.random.uniform(k4, (4 * H,), jnp.float32, -k, k)
        layers.append(lp)
    key, k1, k2 = jax.random.split(key, 3)
    kf = 1.0 / math.sqrt(2 * H)
    fc_w = jax.random.uniform(k1, (forecast_length, 2 * H), jnp.float32, -kf, kf)
    fc_b = jax.random.uniform(k2, (forecast_length,), jnp.float32, -kf, kf)
    return {"layers": layers, "fc_w": fc_w, "fc_b": fc_b}


def reference_forward(pt_params, x):
    """Pure-JAX reference mirroring torch.nn.LSTM(bidirectional) + Linear in eval mode."""
    B, T, _ = x.shape

    def cell(x_t, h, c, w_ih, w_hh, b_ih, b_hh):
        H = h.shape[1]
        g = x_t @ w_ih.T + h @ w_hh.T + b_ih + b_hh
        i = jax.nn.sigmoid(g[:, 0 * H:1 * H])
        f = jax.nn.sigmoid(g[:, 1 * H:2 * H])
        gg = jnp.tanh(g[:, 2 * H:3 * H])
        o = jax.nn.sigmoid(g[:, 3 * H:4 * H])
        c = f * c + i * gg
        return o * jnp.tanh(c), c

    seq = x
    for lp in pt_params["layers"]:
        H = lp["w_hh_f"].shape[1]
        h_f = jnp.zeros((B, H), jnp.float32); c_f = jnp.zeros((B, H), jnp.float32)
        h_r = jnp.zeros((B, H), jnp.float32); c_r = jnp.zeros((B, H), jnp.float32)
        outs_f, outs_r = [], []
        for t in range(T):
            h_f, c_f = cell(seq[:, t], h_f, c_f, lp["w_ih_f"], lp["w_hh_f"],
                            lp["b_ih_f"], lp["b_hh_f"])
            outs_f.append(h_f)
        for t in range(T - 1, -1, -1):
            h_r, c_r = cell(seq[:, t], h_r, c_r, lp["w_ih_r"], lp["w_hh_r"],
                            lp["b_ih_r"], lp["b_hh_r"])
            outs_r.append(h_r)
        outs_r = outs_r[::-1]
        seq = jnp.stack([jnp.concatenate([f_, r_], axis=-1)
                         for f_, r_ in zip(outs_f, outs_r)], axis=1)
        # inter-layer dropout: identity in eval mode
    last = seq[:, -1, :]
    return last @ pt_params["fc_w"].T + pt_params["fc_b"]


# --------------------------------------------------------------------------------------
if __name__ == "__main__":
    B, T = 2, 8
    input_size, hidden_size, num_layers, forecast_length = 7, 32, 2, 1

    key = jax.random.PRNGKey(0)
    kx, kp = jax.random.split(key)
    x = jax.random.normal(kx, (B, T, input_size), jnp.float32)

    pt_params = init_pt_params(kp, input_size, hidden_size, num_layers, forecast_length)
    params = pack_params(pt_params)

    out = jax.jit(lstm_model_multistep_forward)(params, x)
    jax.block_until_ready(out)
    assert out.shape == (B, forecast_length)
    assert bool(jnp.all(jnp.isfinite(out)))

    ref = reference_forward(pt_params, x)
    assert jnp.allclose(out, ref, atol=1e-2, rtol=1e-2), ("kernel/reference mismatch", out, ref)

    print("KERNEL_OK")
</pallas_src>

<mosaic_0001>
module attributes {stable_mosaic.version = 11 : i64} {
  func.func @kernel(%arg0: memref<64x7xf32, #tpu.memory_space<vmem>>, %arg1: memref<7x256xf32, #tpu.memory_space<vmem>>, %arg2: memref<64x256xf32, #tpu.memory_space<vmem>>, %arg3: memref<1x256xf32, #tpu.memory_space<vmem>>, %arg4: memref<64x256xf32, #tpu.memory_space<vmem>>, %arg5: memref<64x256xf32, #tpu.memory_space<vmem>>, %arg6: memref<1x256xf32, #tpu.memory_space<vmem>>, %arg7: memref<64x1xf32, #tpu.memory_space<vmem>>, %arg8: memref<1x1xf32, #tpu.memory_space<vmem>>, %arg9: memref<8x1xf32, #tpu.memory_space<vmem>>, %arg10: memref<64x256xf32, #tpu.memory_space<vmem>>, %arg11: memref<64x64xf32, #tpu.memory_space<vmem>>) attributes {dimension_semantics = [], scalar_prefetch = 0 : i64, scratch_operands = 2 : i64, tpu.core_type = #tpu.core_type<tc>} {
    %0 = tpu.iota {dimensions = array<i32: 1>} : vector<8x256xi32>
    %c0_i32 = arith.constant 0 : i32
    %1 = vector.broadcast %c0_i32 : i32 to vector<8x256xi32>
    %2 = arith.cmpi slt, %0, %1 : vector<8x256xi32>
    %c0_i32_0 = arith.constant 0 : i32
    %3 = vector.broadcast %c0_i32_0 : i32 to vector<8x256xi32>
    %4 = arith.cmpi sge, %0, %3 : vector<8x256xi32>
    %c32_i32 = arith.constant 32 : i32
    %5 = vector.broadcast %c32_i32 : i32 to vector<8x256xi32>
    %6 = arith.cmpi slt, %0, %5 : vector<8x256xi32>
    %7 = arith.andi %4, %6 : vector<8x256xi1>
    %8 = arith.ori %2, %7 : vector<8x256xi1>
    %c64_i32 = arith.constant 64 : i32
    %9 = vector.broadcast %c64_i32 : i32 to vector<8x256xi32>
    %10 = arith.cmpi sge, %0, %9 : vector<8x256xi32>
    %c96_i32 = arith.constant 96 : i32
    %11 = vector.broadcast %c96_i32 : i32 to vector<8x256xi32>
    %12 = arith.cmpi slt, %0, %11 : vector<8x256xi32>
    %13 = arith.andi %10, %12 : vector<8x256xi1>
    %14 = arith.ori %8, %13 : vector<8x256xi1>
    %c128_i32 = arith.constant 128 : i32
    %15 = vector.broadcast %c128_i32 : i32 to vector<8x256xi32>
    %16 = arith.cmpi sge, %0, %15 : vector<8x256xi32>
    %c160_i32 = arith.constant 160 : i32
    %17 = vector.broadcast %c160_i32 : i32 to vector<8x256xi32>
    %18 = arith.cmpi slt, %0, %17 : vector<8x256xi32>
    %19 = arith.andi %16, %18 : vector<8x256xi1>
    %20 = arith.ori %14, %19 : vector<8x256xi1>
    %c192_i32 = arith.constant 192 : i32
    %21 = vector.broadcast %c192_i32 : i32 to vector<8x256xi32>
    %22 = arith.cmpi sge, %0, %21 : vector<8x256xi32>
    %c224_i32 = arith.constant 224 : i32
    %23 = vector.broadcast %c224_i32 : i32 to vector<8x256xi32>
    %24 = arith.cmpi slt, %0, %23 : vector<8x256xi32>
    %25 = arith.andi %22, %24 : vector<8x256xi1>
    %26 = arith.ori %20, %25 : vector<8x256xi1>
    %27 = tpu.iota {dimensions = array<i32: 1>} : vector<8x64xi32>
    %c32_i32_1 = arith.constant 32 : i32
    %28 = vector.broadcast %c32_i32_1 : i32 to vector<8x64xi32>
    %29 = arith.cmpi slt, %27, %28 : vector<8x64xi32>
    %c0 = arith.constant 0 : index
    %c0_2 = arith.constant 0 : index
    %30 = vector.load %arg0[%c0, %c0_2] : memref<64x7xf32, #tpu.memory_space<vmem>>, vector<64x7xf32>
    %c0_3 = arith.constant 0 : index
    %c0_4 = arith.constant 0 : index
    %31 = vector.load %arg1[%c0_3, %c0_4] : memref<7x256xf32, #tpu.memory_space<vmem>>, vector<7x256xf32>
    %cst = arith.constant dense<0.000000e+00> : vector<64x256xf32>
    %32 = tpu.matmul %30, %31, %cst {dimension_numbers = #tpu.dot_dimension_numbers<[1], [0], [0], [1], [0, 0, 1, 1], [], []>} : vector<64x7xf32>, vector<7x256xf32>, vector<64x256xf32> -> vector<64x256xf32>
    %c0_5 = arith.constant 0 : index
    %c0_6 = arith.constant 0 : index
    %33 = vector.load %arg3[%c0_5, %c0_6] : memref<1x256xf32, #tpu.memory_space<vmem>>, vector<1x256xf32>
    %34 = vector.broadcast %33 : vector<1x256xf32> to vector<64x256xf32>
    %35 = arith.addf %32, %34 : vector<64x256xf32>
    %c0_7 = arith.constant 0 : index
    %c0_8 = arith.constant 0 : index
    %36 = vector.load %arg10[%c0_7, %c0_8] : memref<64x256xf32, #tpu.memory_space<vmem>>, vector<64x256xf32>
    tpu.vector_store %arg10[%c0_7, %c0_8], %35 {strides = array<i32>} : memref<64x256xf32, #tpu.memory_space<vmem>>, vector<64x256xf32>,
    %c0_9 = arith.constant 0 : index
    %c0_10 = arith.constant 0 : index
    %37 = vector.load %arg2[%c0_9, %c0_10] : memref<64x256xf32, #tpu.memory_space<vmem>>, vector<64x256xf32>
    %cst_11 = arith.constant 0.000000e+00 : f32
    %38 = vector.broadcast %cst_11 : f32 to vector<8x64xf32>
    %cst_12 = arith.constant 0.000000e+00 : f32
    %39 = vector.broadcast %cst_12 : f32 to vector<8x64xf32>
    %cst_13 = arith.constant dense<0.000000e+00> : vector<8x256xf32>
    %40 = tpu.matmul %38, %37, %cst_13 {dimension_numbers = #tpu.dot_dimension_numbers<[1], [0], [0], [1], [0, 0, 1, 1], [], []>} : vector<8x64xf32>, vector<64x256xf32>, vector<8x256xf32> -> vector<8x256xf32>
    %c0_14 = arith.constant 0 : index
    %c0_15 = arith.constant 0 : index
    %41 = vector.load %arg10[%c0_14, %c0_15] : memref<64x256xf32, #tpu.memory_space<vmem>>, vector<8x256xf32>
    %c56 = arith.constant 56 : index
    %c0_16 = arith.constant 0 : index
    %42 = vector.load %arg10[%c56, %c0_16] : memref<64x256xf32, #tpu.memory_space<vmem>>, vector<8x256xf32>
    %43 = arith.select %26, %41, %42 : vector<8x256xi1>, vector<8x256xf32>
    %44 = arith.addf %40, %43 : vector<8x256xf32>
    %45 = vector.extract_strided_slice %44 {offsets = [0, 0], sizes = [8, 192], strides = [1, 1]} : vector<8x256xf32> to vector<8x192xf32>
    %cst_17 = arith.constant 5.000000e-01 : f32
    %46 = vector.broadcast %cst_17 : f32 to vector<8x192xf32>
    %47 = arith.mulf %46, %45 : vector<8x192xf32>
    %48 = math.tanh %47 : vector<8x192xf32>
    %cst_18 = arith.constant 5.000000e-01 : f32
    %49 = vector.broadcast %cst_18 : f32 to vector<8x192xf32>
    %50 = arith.mulf %49, %48 : vector<8x192xf32>
    %cst_19 = arith.constant 5.000000e-01 : f32
    %51 = vector.broadcast %cst_19 : f32 to vector<8x192xf32>
    %52 = arith.addf %50, %51 : vector<8x192xf32>
    %53 = vector.extract_strided_slice %44 {offsets = [0, 192], sizes = [8, 64], strides = [1, 1]} : vector<8x256xf32> to vector<8x64xf32>
    %54 = math.tanh %53 : vector<8x64xf32>
    %55 = vector.extract_strided_slice %52 {offsets = [0, 64], sizes = [8, 64], strides = [1, 1]} : vector<8x192xf32> to vector<8x64xf32>
    %56 = arith.mulf %55, %39 : vector<8x64xf32>
    %57 = vector.extract_strided_slice %52 {offsets = [0, 0], sizes = [8, 64], strides = [1, 1]} : vector<8x192xf32> to vector<8x64xf32>
    %58 = arith.mulf %57, %54 : vector<8x64xf32>
    %59 = arith.addf %56, %58 : vector<8x64xf32>
    %60 = vector.extract_strided_slice %52 {offsets = [0, 128], sizes = [8, 64], strides = [1, 1]} : vector<8x192xf32> to vector<8x64xf32>
    %61 = math.tanh %59 : vector<8x64xf32>
    %62 = arith.mulf %60, %61 : vector<8x64xf32>
    %63 = vector.extract_strided_slice %62 {offsets = [0, 0], sizes = [8, 32], strides = [1, 1]} : vector<8x64xf32> to vector<8x32xf32>
    %c0_20 = arith.constant 0 : index
    %c0_21 = arith.constant 0 : index
    %64 = vector.load %arg11[%c0_20, %c0_21] : memref<64x64xf32, #tpu.memory_space<vmem>>, vector<8x32xf32>
    tpu.vector_store %arg11[%c0_20, %c0_21], %63 {strides = array<i32>} : memref<64x64xf32, #tpu.memory_space<vmem>>, vector<8x32xf32>,
    %65 = vector.extract_strided_slice %62 {offsets = [0, 32], sizes = [8, 32], strides = [1, 1]} : vector<8x64xf32> to vector<8x32xf32>
    %c56_22 = arith.constant 56 : index
    %c32 = arith.constant 32 : index
    %66 = vector.load %arg11[%c56_22, %c32] : memref<64x64xf32, #tpu.memory_space<vmem>>, vector<8x32xf32>
    tpu.vector_store %arg11[%c56_22, %c32], %65 {strides = array<i32>} : memref<64x64xf32, #tpu.memory_space<vmem>>, vector<8x32xf32>,
    %cst_23 = arith.constant dense<0.000000e+00> : vector<8x256xf32>
    %67 = tpu.matmul %62, %37, %cst_23 {dimension_numbers = #tpu.dot_dimension_numbers<[1], [0], [0], [1], [0, 0, 1, 1], [], []>} : vector<8x64xf32>, vector<64x256xf32>, vector<8x256xf32> -> vector<8x256xf32>
    %c8 = arith.constant 8 : index
    %c0_24 = arith.constant 0 : index
    %68 = vector.load %arg10[%c8, %c0_24] : memref<64x256xf32, #tpu.memory_space<vmem>>, vector<8x256xf32>
    %c48 = arith.constant 48 : index
    %c0_25 = arith.constant 0 : index
    %69 = vector.load %arg10[%c48, %c0_25] : memref<64x256xf32, #tpu.memory_space<vmem>>, vector<8x256xf32>
    %70 = arith.select %26, %68, %69 : vector<8x256xi1>, vector<8x256xf32>
    %71 = arith.addf %67, %70 : vector<8x256xf32>
    %72 = vector.extract_strided_slice %71 {offsets = [0, 0], sizes = [8, 192], strides = [1, 1]} : vector<8x256xf32> to vector<8x192xf32>
    %cst_26 = arith.constant 5.000000e-01 : f32
    %73 = vector.broadcast %cst_26 : f32 to vector<8x192xf32>
    %74 = arith.mulf %73, %72 : vector<8x192xf32>
    %75 = math.tanh %74 : vector<8x192xf32>
    %cst_27 = arith.constant 5.000000e-01 : f32
    %76 = vector.broadcast %cst_27 : f32 to vector<8x192xf32>
    %77 = arith.mulf %76, %75 : vector<8x192xf32>
    %cst_28 = arith.constant 5.000000e-01 : f32
    %78 = vector.broadcast %cst_28 : f32 to vector<8x192xf32>
    %79 = arith.addf %77, %78 : vector<8x192xf32>
    %80 = vector.extract_strided_slice %71 {offsets = [0, 192], sizes = [8, 64], strides = [1, 1]} : vector<8x256xf32> to vector<8x64xf32>
    %81 = math.tanh %80 : vector<8x64xf32>
    %82 = vector.extract_strided_slice %79 {offsets = [0, 64], sizes = [8, 64], strides = [1, 1]} : vector<8x192xf32> to vector<8x64xf32>
    %83 = arith.mulf %82, %59 : vector<8x64xf32>
    %84 = vector.extract_strided_slice %79 {offsets = [0, 0], sizes = [8, 64], strides = [1, 1]} : vector<8x192xf32> to vector<8x64xf32>
    %85 = arith.mulf %84, %81 : vector<8x64xf32>
    %86 = arith.addf %83, %85 : vector<8x64xf32>
    %87 = vector.extract_strided_slice %79 {offsets = [0, 128], sizes = [8, 64], strides = [1, 1]} : vector<8x192xf32> to vector<8x64xf32>
    %88 = math.tanh %86 : vector<8x64xf32>
    %89 = arith.mulf %87, %88 : vector<8x64xf32>
    %90 = vector.extract_strided_slice %89 {offsets = [0, 0], sizes = [8, 32], strides = [1, 1]} : vector<8x64xf32> to vector<8x32xf32>
    %c8_29 = arith.constant 8 : index
    %c0_30 = arith.constant 0 : index
    %91 = vector.load %arg11[%c8_29, %c0_30] : memref<64x64xf32, #tpu.memory_space<vmem>>, vector<8x32xf32>
    tpu.vector_store %arg11[%c8_29, %c0_30], %90 {strides = array<i32>} : memref<64x64xf32, #tpu.memory_space<vmem>>, vector<8x32xf32>,
    %92 = vector.extract_strided_slice %89 {offsets = [0, 32], sizes = [8, 32], strides = [1, 1]} : vector<8x64xf32> to vector<8x32xf32>
    %c48_31 = arith.constant 48 : index
    %c32_32 = arith.constant 32 : index
    %93 = vector.load %arg11[%c48_31, %c32_32] : memref<64x64xf32, #tpu.memory_space<vmem>>, vector<8x32xf32>
    tpu.vector_store %arg11[%c48_31, %c32_32], %92 {strides = array<i32>} : memref<64x64xf32, #tpu.memory_space<vmem>>, vector<8x32xf32>,
    %cst_33 = arith.constant dense<0.000000e+00> : vector<8x256xf32>
    %94 = tpu.matmul %89, %37, %cst_33 {dimension_numbers = #tpu.dot_dimension_numbers<[1], [0], [0], [1], [0, 0, 1, 1], [], []>} : vector<8x64xf32>, vector<64x256xf32>, vector<8x256xf32> -> vector<8x256xf32>
    %c16 = arith.constant 16 : index
    %c0_34 = arith.constant 0 : index
    %95 = vector.load %arg10[%c16, %c0_34] : memref<64x256xf32, #tpu.memory_space<vmem>>, vector<8x256xf32>
    %c40 = arith.constant 40 : index
    %c0_35 = arith.constant 0 : index
    %96 = vector.load %arg10[%c40, %c0_35] : memref<64x256xf32, #tpu.memory_space<vmem>>, vector<8x256xf32>
    %97 = arith.select %26, %95, %96 : vector<8x256xi1>, vector<8x256xf32>
    %98 = arith.addf %94, %97 : vector<8x256xf32>
    %99 = vector.extract_strided_slice %98 {offsets = [0, 0], sizes = [8, 192], strides = [1, 1]} : vector<8x256xf32> to vector<8x192xf32>
    %cst_36 = arith.constant 5.000000e-01 : f32
    %100 = vector.broadcast %cst_36 : f32 to vector<8x192xf32>
    %101 = arith.mulf %100, %99 : vector<8x192xf32>
    %102 = math.tanh %101 : vector<8x192xf32>
    %cst_37 = arith.constant 5.000000e-01 : f32
    %103 = vector.broadcast %cst_37 : f32 to vector<8x192xf32>
    %104 = arith.mulf %103, %102 : vector<8x192xf32>
    %cst_38 = arith.constant 5.000000e-01 : f32
    %105 = vector.broadcast %cst_38 : f32 to vector<8x192xf32>
    %106 = arith.addf %104, %105 : vector<8x192xf32>
    %107 = vector.extract_strided_slice %98 {offsets = [0, 192], sizes = [8, 64], strides = [1, 1]} : vector<8x256xf32> to vector<8x64xf32>
    %108 = math.tanh %107 : vector<8x64xf32>
    %109 = vector.extract_strided_slice %106 {offsets = [0, 64], sizes = [8, 64], strides = [1, 1]} : vector<8x192xf32> to vector<8x64xf32>
    %110 = arith.mulf %109, %86 : vector<8x64xf32>
    %111 = vector.extract_strided_slice %106 {offsets = [0, 0], sizes = [8, 64], strides = [1, 1]} : vector<8x192xf32> to vector<8x64xf32>
    %112 = arith.mulf %111, %108 : vector<8x64xf32>
    %113 = arith.addf %110, %112 : vector<8x64xf32>
    %114 = vector.extract_strided_slice %106 {offsets = [0, 128], sizes = [8, 64], strides = [1, 1]} : vector<8x192xf32> to vector<8x64xf32>
    %115 = math.tanh %113 : vector<8x64xf32>
    %116 = arith.mulf %114, %115 : vector<8x64xf32>
    %117 = vector.extract_strided_slice %116 {offsets = [0, 0], sizes = [8, 32], strides = [1, 1]} : vector<8x64xf32> to vector<8x32xf32>
    %c16_39 = arith.constant 16 : index
    %c0_40 = arith.constant 0 : index
    %118 = vector.load %arg11[%c16_39, %c0_40] : memref<64x64xf32, #tpu.memory_space<vmem>>, vector<8x32xf32>
    tpu.vector_store %arg11[%c16_39, %c0_40], %117 {strides = array<i32>} : memref<64x64xf32, #tpu.memory_space<vmem>>, vector<8x32xf32>,
    %119 = vector.extract_strided_slice %116 {offsets = [0, 32], sizes = [8, 32], strides = [1, 1]} : vector<8x64xf32> to vector<8x32xf32>
    %c40_41 = arith.constant 40 : index
    %c32_42 = arith.constant 32 : index
    %120 = vector.load %arg11[%c40_41, %c32_42] : memref<64x64xf32, #tpu.memory_space<vmem>>, vector<8x32xf32>
    tpu.vector_store %arg11[%c40_41, %c32_42], %119 {strides = array<i32>} : memref<64x64xf32, #tpu.memory_space<vmem>>, vector<8x32xf32>,
    %cst_43 = arith.constant dense<0.000000e+00> : vector<8x256xf32>
    %121 = tpu.matmul %116, %37, %cst_43 {dimension_numbers = #tpu.dot_dimension_numbers<[1], [0], [0], [1], [0, 0, 1, 1], [], []>} : vector<8x64xf32>, vector<64x256xf32>, vector<8x256xf32> -> vector<8x256xf32>
    %c24 = arith.constant 24 : index
    %c0_44 = arith.constant 0 : index
    %122 = vector.load %arg10[%c24, %c0_44] : memref<64x256xf32, #tpu.memory_space<vmem>>, vector<8x256xf32>
    %c32_45 = arith.constant 32 : index
    %c0_46 = arith.constant 0 : index
    %123 = vector.load %arg10[%c32_45, %c0_46] : memref<64x256xf32, #tpu.memory_space<vmem>>, vector<8x256xf32>
    %124 = arith.select %26, %122, %123 : vector<8x256xi1>, vector<8x256xf32>
    %125 = arith.addf %121, %124 : vector<8x256xf32>
    %126 = vector.extract_strided_slice %125 {offsets = [0, 0], sizes = [8, 192], strides = [1, 1]} : vector<8x256xf32> to vector<8x192xf32>
    %cst_47 = arith.constant 5.000000e-01 : f32
    %127 = vector.broadcast %cst_47 : f32 to vector<8x192xf32>
    %128 = arith.mulf %127, %126 : vector<8x192xf32>
    %129 = math.tanh %128 : vector<8x192xf32>
    %cst_48 = arith.constant 5.000000e-01 : f32
    %130 = vector.broadcast %cst_48 : f32 to vector<8x192xf32>
    %131 = arith.mulf %130, %129 : vector<8x192xf32>
    %cst_49 = arith.constant 5.000000e-01 : f32
    %132 = vector.broadcast %cst_49 : f32 to vector<8x192xf32>
    %133 = arith.addf %131, %132 : vector<8x192xf32>
    %134 = vector.extract_strided_slice %125 {offsets = [0, 192], sizes = [8, 64], strides = [1, 1]} : vector<8x256xf32> to vector<8x64xf32>
    %135 = math.tanh %134 : vector<8x64xf32>
    %136 = vector.extract_strided_slice %133 {offsets = [0, 64], sizes = [8, 64], strides = [1, 1]} : vector<8x192xf32> to vector<8x64xf32>
    %137 = arith.mulf %136, %113 : vector<8x64xf32>
    %138 = vector.extract_strided_slice %133 {offsets = [0, 0], sizes = [8, 64], strides = [1, 1]} : vector<8x192xf32> to vector<8x64xf32>
    %139 = arith.mulf %138, %135 : vector<8x64xf32>
    %140 = arith.addf %137, %139 : vector<8x64xf32>
    %141 = vector.extract_strided_slice %133 {offsets = [0, 128], sizes = [8, 64], strides = [1, 1]} : vector<8x192xf32> to vector<8x64xf32>
    %142 = math.tanh %140 : vector<8x64xf32>
    %143 = arith.mulf %141, %142 : vector<8x64xf32>
    %144 = vector.extract_strided_slice %143 {offsets = [0, 0], sizes = [8, 32], strides = [1, 1]} : vector<8x64xf32> to vector<8x32xf32>
    %c24_50 = arith.constant 24 : index
    %c0_51 = arith.constant 0 : index
    %145 = vector.load %arg11[%c24_50, %c0_51] : memref<64x64xf32, #tpu.memory_space<vmem>>, vector<8x32xf32>
    tpu.vector_store %arg11[%c24_50, %c0_51], %144 {strides = array<i32>} : memref<64x64xf32, #tpu.memory_space<vmem>>, vector<8x32xf32>,
    %146 = vector.extract_strided_slice %143 {offsets = [0, 32], sizes = [8, 32], strides = [1, 1]} : vector<8x64xf32> to vector<8x32xf32>
    %c32_52 = arith.constant 32 : index
    %c32_53 = arith.constant 32 : index
    %147 = vector.load %arg11[%c32_52, %c32_53] : memref<64x64xf32, #tpu.memory_space<vmem>>, vector<8x32xf32>
    tpu.vector_store %arg11[%c32_52, %c32_53], %146 {strides = array<i32>} : memref<64x64xf32, #tpu.memory_space<vmem>>, vector<8x32xf32>,
    %cst_54 = arith.constant dense<0.000000e+00> : vector<8x256xf32>
    %148 = tpu.matmul %143, %37, %cst_54 {dimension_numbers = #tpu.dot_dimension_numbers<[1], [0], [0], [1], [0, 0, 1, 1], [], []>} : vector<8x64xf32>, vector<64x256xf32>, vector<8x256xf32> -> vector<8x256xf32>
    %c32_55 = arith.constant 32 : index
    %c0_56 = arith.constant 0 : index
    %149 = vector.load %arg10[%c32_55, %c0_56] : memref<64x256xf32, #tpu.memory_space<vmem>>, vector<8x256xf32>
    %c24_57 = arith.constant 24 : index
    %c0_58 = arith.constant 0 : index
    %150 = vector.load %arg10[%c24_57, %c0_58] : memref<64x256xf32, #tpu.memory_space<vmem>>, vector<8x256xf32>
    %151 = arith.select %26, %149, %150 : vector<8x256xi1>, vector<8x256xf32>
    %152 = arith.addf %148, %151 : vector<8x256xf32>
    %153 = vector.extract_strided_slice %152 {offsets = [0, 0], sizes = [8, 192], strides = [1, 1]} : vector<8x256xf32> to vector<8x192xf32>
    %cst_59 = arith.constant 5.000000e-01 : f32
    %154 = vector.broadcast %cst_59 : f32 to vector<8x192xf32>
    %155 = arith.mulf %154, %153 : vector<8x192xf32>
    %156 = math.tanh %155 : vector<8x192xf32>
    %cst_60 = arith.constant 5.000000e-01 : f32
    %157 = vector.broadcast %cst_60 : f32 to vector<8x192xf32>
    %158 = arith.mulf %157, %156 : vector<8x192xf32>
    %cst_61 = arith.constant 5.000000e-01 : f32
    %159 = vector.broadcast %cst_61 : f32 to vector<8x192xf32>
    %160 = arith.addf %158, %159 : vector<8x192xf32>
    %161 = vector.extract_strided_slice %152 {offsets = [0, 192], sizes = [8, 64], strides = [1, 1]} : vector<8x256xf32> to vector<8x64xf32>
    %162 = math.tanh %161 : vector<8x64xf32>
    %163 = vector.extract_strided_slice %160 {offsets = [0, 64], sizes = [8, 64], strides = [1, 1]} : vector<8x192xf32> to vector<8x64xf32>
    %164 = arith.mulf %163, %140 : vector<8x64xf32>
    %165 = vector.extract_strided_slice %160 {offsets = [0, 0], sizes = [8, 64], strides = [1, 1]} : vector<8x192xf32> to vector<8x64xf32>
    %166 = arith.mulf %165, %162 : vector<8x64xf32>
    %167 = arith.addf %164, %166 : vector<8x64xf32>
    %168 = vector.extract_strided_slice %160 {offsets = [0, 128], sizes = [8, 64], strides = [1, 1]} : vector<8x192xf32> to vector<8x64xf32>
    %169 = math.tanh %167 : vector<8x64xf32>
    %170 = arith.mulf %168, %169 : vector<8x64xf32>
    %171 = vector.extract_strided_slice %170 {offsets = [0, 0], sizes = [8, 32], strides = [1, 1]} : vector<8x64xf32> to vector<8x32xf32>
    %c32_62 = arith.constant 32 : index
    %c0_63 = arith.constant 0 : index
    %172 = vector.load %arg11[%c32_62, %c0_63] : memref<64x64xf32, #tpu.memory_space<vmem>>, vector<8x32xf32>
    tpu.vector_store %arg11[%c32_62, %c0_63], %171 {strides = array<i32>} : memref<64x64xf32, #tpu.memory_space<vmem>>, vector<8x32xf32>,
    %173 = vector.extract_strided_slice %170 {offsets = [0, 32], sizes = [8, 32], strides = [1, 1]} : vector<8x64xf32> to vector<8x32xf32>
    %c24_64 = arith.constant 24 : index
    %c32_65 = arith.constant 32 : index
    %174 = vector.load %arg11[%c24_64, %c32_65] : memref<64x64xf32, #tpu.memory_space<vmem>>, vector<8x32xf32>
    tpu.vector_store %arg11[%c24_64, %c32_65], %173 {strides = array<i32>} : memref<64x64xf32, #tpu.memory_space<vmem>>, vector<8x32xf32>,
    %cst_66 = arith.constant dense<0.000000e+00> : vector<8x256xf32>
    %175 = tpu.matmul %170, %37, %cst_66 {dimension_numbers = #tpu.dot_dimension_numbers<[1], [0], [0], [1], [0, 0, 1, 1], [], []>} : vector<8x64xf32>, vector<64x256xf32>, vector<8x256xf32> -> vector<8x256xf32>
    %c40_67 = arith.constant 40 : index
    %c0_68 = arith.constant 0 : index
    %176 = vector.load %arg10[%c40_67, %c0_68] : memref<64x256xf32, #tpu.memory_space<vmem>>, vector<8x256xf32>
    %c16_69 = arith.constant 16 : index
    %c0_70 = arith.constant 0 : index
    %177 = vector.load %arg10[%c16_69, %c0_70] : memref<64x256xf32, #tpu.memory_space<vmem>>, vector<8x256xf32>
    %178 = arith.select %26, %176, %177 : vector<8x256xi1>, vector<8x256xf32>
    %179 = arith.addf %175, %178 : vector<8x256xf32>
    %180 = vector.extract_strided_slice %179 {offsets = [0, 0], sizes = [8, 192], strides = [1, 1]} : vector<8x256xf32> to vector<8x192xf32>
    %cst_71 = arith.constant 5.000000e-01 : f32
    %181 = vector.broadcast %cst_71 : f32 to vector<8x192xf32>
    %182 = arith.mulf %181, %180 : vector<8x192xf32>
    %183 = math.tanh %182 : vector<8x192xf32>
    %cst_72 = arith.constant 5.000000e-01 : f32
    %184 = vector.broadcast %cst_72 : f32 to vector<8x192xf32>
    %185 = arith.mulf %184, %183 : vector<8x192xf32>
    %cst_73 = arith.constant 5.000000e-01 : f32
    %186 = vector.broadcast %cst_73 : f32 to vector<8x192xf32>
    %187 = arith.addf %185, %186 : vector<8x192xf32>
    %188 = vector.extract_strided_slice %179 {offsets = [0, 192], sizes = [8, 64], strides = [1, 1]} : vector<8x256xf32> to vector<8x64xf32>
    %189 = math.tanh %188 : vector<8x64xf32>
    %190 = vector.extract_strided_slice %187 {offsets = [0, 64], sizes = [8, 64], strides = [1, 1]} : vector<8x192xf32> to vector<8x64xf32>
    %191 = arith.mulf %190, %167 : vector<8x64xf32>
    %192 = vector.extract_strided_slice %187 {offsets = [0, 0], sizes = [8, 64], strides = [1, 1]} : vector<8x192xf32> to vector<8x64xf32>
    %193 = arith.mulf %192, %189 : vector<8x64xf32>
    %194 = arith.addf %191, %193 : vector<8x64xf32>
    %195 = vector.extract_strided_slice %187 {offsets = [0, 128], sizes = [8, 64], strides = [1, 1]} : vector<8x192xf32> to vector<8x64xf32>
    %196 = math.tanh %194 : vector<8x64xf32>
    %197 = arith.mulf %195, %196 : vector<8x64xf32>
    %198 = vector.extract_strided_slice %197 {offsets = [0, 0], sizes = [8, 32], strides = [1, 1]} : vector<8x64xf32> to vector<8x32xf32>
    %c40_74 = arith.constant 40 : index
    %c0_75 = arith.constant 0 : index
    %199 = vector.load %arg11[%c40_74, %c0_75] : memref<64x64xf32, #tpu.memory_space<vmem>>, vector<8x32xf32>
    tpu.vector_store %arg11[%c40_74, %c0_75], %198 {strides = array<i32>} : memref<64x64xf32, #tpu.memory_space<vmem>>, vector<8x32xf32>,
    %200 = vector.extract_strided_slice %197 {offsets = [0, 32], sizes = [8, 32], strides = [1, 1]} : vector<8x64xf32> to vector<8x32xf32>
    %c16_76 = arith.constant 16 : index
    %c32_77 = arith.constant 32 : index
    %201 = vector.load %arg11[%c16_76, %c32_77] : memref<64x64xf32, #tpu.memory_space<vmem>>, vector<8x32xf32>
    tpu.vector_store %arg11[%c16_76, %c32_77], %200 {strides = array<i32>} : memref<64x64xf32, #tpu.memory_space<vmem>>, vector<8x32xf32>,
    %cst_78 = arith.constant dense<0.000000e+00> : vector<8x256xf32>
    %202 = tpu.matmul %197, %37, %cst_78 {dimension_numbers = #tpu.dot_dimension_numbers<[1], [0], [0], [1], [0, 0, 1, 1], [], []>} : vector<8x64xf32>, vector<64x256xf32>, vector<8x256xf32> -> vector<8x256xf32>
    %c48_79 = arith.constant 48 : index
    %c0_80 = arith.constant 0 : index
    %203 = vector.load %arg10[%c48_79, %c0_80] : memref<64x256xf32, #tpu.memory_space<vmem>>, vector<8x256xf32>
    %c8_81 = arith.constant 8 : index
    %c0_82 = arith.constant 0 : index
    %204 = vector.load %arg10[%c8_81, %c0_82] : memref<64x256xf32, #tpu.memory_space<vmem>>, vector<8x256xf32>
    %205 = arith.select %26, %203, %204 : vector<8x256xi1>, vector<8x256xf32>
    %206 = arith.addf %202, %205 : vector<8x256xf32>
    %207 = vector.extract_strided_slice %206 {offsets = [0, 0], sizes = [8, 192], strides = [1, 1]} : vector<8x256xf32> to vector<8x192xf32>
    %cst_83 = arith.constant 5.000000e-01 : f32
    %208 = vector.broadcast %cst_83 : f32 to vector<8x192xf32>
    %209 = arith.mulf %208, %207 : vector<8x192xf32>
    %210 = math.tanh %209 : vector<8x192xf32>
    %cst_84 = arith.constant 5.000000e-01 : f32
    %211 = vector.broadcast %cst_84 : f32 to vector<8x192xf32>
    %212 = arith.mulf %211, %210 : vector<8x192xf32>
    %cst_85 = arith.constant 5.000000e-01 : f32
    %213 = vector.broadcast %cst_85 : f32 to vector<8x192xf32>
    %214 = arith.addf %212, %213 : vector<8x192xf32>
    %215 = vector.extract_strided_slice %206 {offsets = [0, 192], sizes = [8, 64], strides = [1, 1]} : vector<8x256xf32> to vector<8x64xf32>
    %216 = math.tanh %215 : vector<8x64xf32>
    %217 = vector.extract_strided_slice %214 {offsets = [0, 64], sizes = [8, 64], strides = [1, 1]} : vector<8x192xf32> to vector<8x64xf32>
    %218 = arith.mulf %217, %194 : vector<8x64xf32>
    %219 = vector.extract_strided_slice %214 {offsets = [0, 0], sizes = [8, 64], strides = [1, 1]} : vector<8x192xf32> to vector<8x64xf32>
    %220 = arith.mulf %219, %216 : vector<8x64xf32>
    %221 = arith.addf %218, %220 : vector<8x64xf32>
    %222 = vector.extract_strided_slice %214 {offsets = [0, 128], sizes = [8, 64], strides = [1, 1]} : vector<8x192xf32> to vector<8x64xf32>
    %223 = math.tanh %221 : vector<8x64xf32>
    %224 = arith.mulf %222, %223 : vector<8x64xf32>
    %225 = vector.extract_strided_slice %224 {offsets = [0, 0], sizes = [8, 32], strides = [1, 1]} : vector<8x64xf32> to vector<8x32xf32>
    %c48_86 = arith.constant 48 : index
    %c0_87 = arith.constant 0 : index
    %226 = vector.load %arg11[%c48_86, %c0_87] : memref<64x64xf32, #tpu.memory_space<vmem>>, vector<8x32xf32>
    tpu.vector_store %arg11[%c48_86, %c0_87], %225 {strides = array<i32>} : memref<64x64xf32, #tpu.memory_space<vmem>>, vector<8x32xf32>,
    %227 = vector.extract_strided_slice %224 {offsets = [0, 32], sizes = [8, 32], strides = [1, 1]} : vector<8x64xf32> to vector<8x32xf32>
    %c8_88 = arith.constant 8 : index
    %c32_89 = arith.constant 32 : index
    %228 = vector.load %arg11[%c8_88, %c32_89] : memref<64x64xf32, #tpu.memory_space<vmem>>, vector<8x32xf32>
    tpu.vector_store %arg11[%c8_88, %c32_89], %227 {strides = array<i32>} : memref<64x64xf32, #tpu.memory_space<vmem>>, vector<8x32xf32>,
    %cst_90 = arith.constant dense<0.000000e+00> : vector<8x256xf32>
    %229 = tpu.matmul %224, %37, %cst_90 {dimension_numbers = #tpu.dot_dimension_numbers<[1], [0], [0], [1], [0, 0, 1, 1], [], []>} : vector<8x64xf32>, vector<64x256xf32>, vector<8x256xf32> -> vector<8x256xf32>
    %c56_91 = arith.constant 56 : index
    %c0_92 = arith.constant 0 : index
    %230 = vector.load %arg10[%c56_91, %c0_92] : memref<64x256xf32, #tpu.memory_space<vmem>>, vector<8x256xf32>
    %c0_93 = arith.constant 0 : index
    %c0_94 = arith.constant 0 : index
    %231 = vector.load %arg10[%c0_93, %c0_94] : memref<64x256xf32, #tpu.memory_space<vmem>>, vector<8x256xf32>
    %232 = arith.select %26, %230, %231 : vector<8x256xi1>, vector<8x256xf32>
    %233 = arith.addf %229, %232 : vector<8x256xf32>
    %234 = vector.extract_strided_slice %233 {offsets = [0, 0], sizes = [8, 192], strides = [1, 1]} : vector<8x256xf32> to vector<8x192xf32>
    %cst_95 = arith.constant 5.000000e-01 : f32
    %235 = vector.broadcast %cst_95 : f32 to vector<8x192xf32>
    %236 = arith.mulf %235, %234 : vector<8x192xf32>
    %237 = math.tanh %236 : vector<8x192xf32>
    %cst_96 = arith.constant 5.000000e-01 : f32
    %238 = vector.broadcast %cst_96 : f32 to vector<8x192xf32>
    %239 = arith.mulf %238, %237 : vector<8x192xf32>
    %cst_97 = arith.constant 5.000000e-01 : f32
    %240 = vector.broadcast %cst_97 : f32 to vector<8x192xf32>
    %241 = arith.addf %239, %240 : vector<8x192xf32>
    %242 = vector.extract_strided_slice %233 {offsets = [0, 192], sizes = [8, 64], strides = [1, 1]} : vector<8x256xf32> to vector<8x64xf32>
    %243 = math.tanh %242 : vector<8x64xf32>
    %244 = vector.extract_strided_slice %241 {offsets = [0, 64], sizes = [8, 64], strides = [1, 1]} : vector<8x192xf32> to vector<8x64xf32>
    %245 = arith.mulf %244, %221 : vector<8x64xf32>
    %246 = vector.extract_strided_slice %241 {offsets = [0, 0], sizes = [8, 64], strides = [1, 1]} : vector<8x192xf32> to vector<8x64xf32>
    %247 = arith.mulf %246, %243 : vector<8x64xf32>
    %248 = arith.addf %245, %247 : vector<8x64xf32>
    %249 = vector.extract_strided_slice %241 {offsets = [0, 128], sizes = [8, 64], strides = [1, 1]} : vector<8x192xf32> to vector<8x64xf32>
    %250 = math.tanh %248 : vector<8x64xf32>
    %251 = arith.mulf %249, %250 : vector<8x64xf32>
    %252 = vector.extract_strided_slice %251 {offsets = [0, 0], sizes = [8, 32], strides = [1, 1]} : vector<8x64xf32> to vector<8x32xf32>
    %c56_98 = arith.constant 56 : index
    %c0_99 = arith.constant 0 : index
    %253 = vector.load %arg11[%c56_98, %c0_99] : memref<64x64xf32, #tpu.memory_space<vmem>>, vector<8x32xf32>
    tpu.vector_store %arg11[%c56_98, %c0_99], %252 {strides = array<i32>} : memref<64x64xf32, #tpu.memory_space<vmem>>, vector<8x32xf32>,
    %254 = vector.extract_strided_slice %251 {offsets = [0, 32], sizes = [8, 32], strides = [1, 1]} : vector<8x64xf32> to vector<8x32xf32>
    %c0_100 = arith.constant 0 : index
    %c32_101 = arith.constant 32 : index
    %255 = vector.load %arg11[%c0_100, %c32_101] : memref<64x64xf32, #tpu.memory_space<vmem>>, vector<8x32xf32>
    tpu.vector_store %arg11[%c0_100, %c32_101], %254 {strides = array<i32>} : memref<64x64xf32, #tpu.memory_space<vmem>>, vector<8x32xf32>,
    %c0_102 = arith.constant 0 : index
    %c0_103 = arith.constant 0 : index
    %256 = vector.load %arg11[%c0_102, %c0_103] : memref<64x64xf32, #tpu.memory_space<vmem>>, vector<64x64xf32>
    %c0_104 = arith.constant 0 : index
    %c0_105 = arith.constant 0 : index
    %257 = vector.load %arg4[%c0_104, %c0_105] : memref<64x256xf32, #tpu.memory_space<vmem>>, vector<64x256xf32>
    %cst_106 = arith.constant dense<0.000000e+00> : vector<64x256xf32>
    %258 = tpu.matmul %256, %257, %cst_106 {dimension_numbers = #tpu.dot_dimension_numbers<[1], [0], [0], [1], [0, 0, 1, 1], [], []>} : vector<64x64xf32>, vector<64x256xf32>, vector<64x256xf32> -> vector<64x256xf32>
    %c0_107 = arith.constant 0 : index
    %c0_108 = arith.constant 0 : index
    %259 = vector.load %arg6[%c0_107, %c0_108] : memref<1x256xf32, #tpu.memory_space<vmem>>, vector<1x256xf32>
    %260 = vector.broadcast %259 : vector<1x256xf32> to vector<64x256xf32>
    %261 = arith.addf %258, %260 : vector<64x256xf32>
    %c0_109 = arith.constant 0 : index
    %c0_110 = arith.constant 0 : index
    %262 = vector.load %arg10[%c0_109, %c0_110] : memref<64x256xf32, #tpu.memory_space<vmem>>, vector<64x256xf32>
    tpu.vector_store %arg10[%c0_109, %c0_110], %261 {strides = array<i32>} : memref<64x256xf32, #tpu.memory_space<vmem>>, vector<64x256xf32>,
    %c0_111 = arith.constant 0 : index
    %c0_112 = arith.constant 0 : index
    %263 = vector.load %arg5[%c0_111, %c0_112] : memref<64x256xf32, #tpu.memory_space<vmem>>, vector<64x256xf32>
    %cst_113 = arith.constant 0.000000e+00 : f32
    %264 = vector.broadcast %cst_113 : f32 to vector<8x64xf32>
    %cst_114 = arith.constant 0.000000e+00 : f32
    %265 = vector.broadcast %cst_114 : f32 to vector<8x64xf32>
    %cst_115 = arith.constant dense<0.000000e+00> : vector<8x256xf32>
    %266 = tpu.matmul %264, %263, %cst_115 {dimension_numbers = #tpu.dot_dimension_numbers<[1], [0], [0], [1], [0, 0, 1, 1], [], []>} : vector<8x64xf32>, vector<64x256xf32>, vector<8x256xf32> -> vector<8x256xf32>
    %c0_116 = arith.constant 0 : index
    %c0_117 = arith.constant 0 : index
    %267 = vector.load %arg10[%c0_116, %c0_117] : memref<64x256xf32, #tpu.memory_space<vmem>>, vector<8x256xf32>
    %c56_118 = arith.constant 56 : index
    %c0_119 = arith.constant 0 : index
    %268 = vector.load %arg10[%c56_118, %c0_119] : memref<64x256xf32, #tpu.memory_space<vmem>>, vector<8x256xf32>
    %269 = arith.select %26, %267, %268 : vector<8x256xi1>, vector<8x256xf32>
    %270 = arith.addf %266, %269 : vector<8x256xf32>
    %271 = vector.extract_strided_slice %270 {offsets = [0, 0], sizes = [8, 192], strides = [1, 1]} : vector<8x256xf32> to vector<8x192xf32>
    %cst_120 = arith.constant 5.000000e-01 : f32
    %272 = vector.broadcast %cst_120 : f32 to vector<8x192xf32>
    %273 = arith.mulf %272, %271 : vector<8x192xf32>
    %274 = math.tanh %273 : vector<8x192xf32>
    %cst_121 = arith.constant 5.000000e-01 : f32
    %275 = vector.broadcast %cst_121 : f32 to vector<8x192xf32>
    %276 = arith.mulf %275, %274 : vector<8x192xf32>
    %cst_122 = arith.constant 5.000000e-01 : f32
    %277 = vector.broadcast %cst_122 : f32 to vector<8x192xf32>
    %278 = arith.addf %276, %277 : vector<8x192xf32>
    %279 = vector.extract_strided_slice %270 {offsets = [0, 192], sizes = [8, 64], strides = [1, 1]} : vector<8x256xf32> to vector<8x64xf32>
    %280 = math.tanh %279 : vector<8x64xf32>
    %281 = vector.extract_strided_slice %278 {offsets = [0, 64], sizes = [8, 64], strides = [1, 1]} : vector<8x192xf32> to vector<8x64xf32>
    %282 = arith.mulf %281, %265 : vector<8x64xf32>
    %283 = vector.extract_strided_slice %278 {offsets = [0, 0], sizes = [8, 64], strides = [1, 1]} : vector<8x192xf32> to vector<8x64xf32>
    %284 = arith.mulf %283, %280 : vector<8x64xf32>
    %285 = arith.addf %282, %284 : vector<8x64xf32>
    %286 = vector.extract_strided_slice %278 {offsets = [0, 128], sizes = [8, 64], strides = [1, 1]} : vector<8x192xf32> to vector<8x64xf32>
    %287 = math.tanh %285 : vector<8x64xf32>
    %288 = arith.mulf %286, %287 : vector<8x64xf32>
    %cst_123 = arith.constant dense<0.000000e+00> : vector<8x256xf32>
    %289 = tpu.matmul %288, %263, %cst_123 {dimension_numbers = #tpu.dot_dimension_numbers<[1], [0], [0], [1], [0, 0, 1, 1], [], []>} : vector<8x64xf32>, vector<64x256xf32>, vector<8x256xf32> -> vector<8x256xf32>
    %c8_124 = arith.constant 8 : index
    %c0_125 = arith.constant 0 : index
    %290 = vector.load %arg10[%c8_124, %c0_125] : memref<64x256xf32, #tpu.memory_space<vmem>>, vector<8x256xf32>
    %c48_126 = arith.constant 48 : index
    %c0_127 = arith.constant 0 : index
    %291 = vector.load %arg10[%c48_126, %c0_127] : memref<64x256xf32, #tpu.memory_space<vmem>>, vector<8x256xf32>
    %292 = arith.select %26, %290, %291 : vector<8x256xi1>, vector<8x256xf32>
    %293 = arith.addf %289, %292 : vector<8x256xf32>
    %294 = vector.extract_strided_slice %293 {offsets = [0, 0], sizes = [8, 192], strides = [1, 1]} : vector<8x256xf32> to vector<8x192xf32>
    %cst_128 = arith.constant 5.000000e-01 : f32
    %295 = vector.broadcast %cst_128 : f32 to vector<8x192xf32>
    %296 = arith.mulf %295, %294 : vector<8x192xf32>
    %297 = math.tanh %296 : vector<8x192xf32>
    %cst_129 = arith.constant 5.000000e-01 : f32
    %298 = vector.broadcast %cst_129 : f32 to vector<8x192xf32>
    %299 = arith.mulf %298, %297 : vector<8x192xf32>
    %cst_130 = arith.constant 5.000000e-01 : f32
    %300 = vector.broadcast %cst_130 : f32 to vector<8x192xf32>
    %301 = arith.addf %299, %300 : vector<8x192xf32>
    %302 = vector.extract_strided_slice %293 {offsets = [0, 192], sizes = [8, 64], strides = [1, 1]} : vector<8x256xf32> to vector<8x64xf32>
    %303 = math.tanh %302 : vector<8x64xf32>
    %304 = vector.extract_strided_slice %301 {offsets = [0, 64], sizes = [8, 64], strides = [1, 1]} : vector<8x192xf32> to vector<8x64xf32>
    %305 = arith.mulf %304, %285 : vector<8x64xf32>
    %306 = vector.extract_strided_slice %301 {offsets = [0, 0], sizes = [8, 64], strides = [1, 1]} : vector<8x192xf32> to vector<8x64xf32>
    %307 = arith.mulf %306, %303 : vector<8x64xf32>
    %308 = arith.addf %305, %307 : vector<8x64xf32>
    %309 = vector.extract_strided_slice %301 {offsets = [0, 128], sizes = [8, 64], strides = [1, 1]} : vector<8x192xf32> to vector<8x64xf32>
    %310 = math.tanh %308 : vector<8x64xf32>
    %311 = arith.mulf %309, %310 : vector<8x64xf32>
    %cst_131 = arith.constant dense<0.000000e+00> : vector<8x256xf32>
    %312 = tpu.matmul %311, %263, %cst_131 {dimension_numbers = #tpu.dot_dimension_numbers<[1], [0], [0], [1], [0, 0, 1, 1], [], []>} : vector<8x64xf32>, vector<64x256xf32>, vector<8x256xf32> -> vector<8x256xf32>
    %c16_132 = arith.constant 16 : index
    %c0_133 = arith.constant 0 : index
    %313 = vector.load %arg10[%c16_132, %c0_133] : memref<64x256xf32, #tpu.memory_space<vmem>>, vector<8x256xf32>
    %c40_134 = arith.constant 40 : index
    %c0_135 = arith.constant 0 : index
    %314 = vector.load %arg10[%c40_134, %c0_135] : memref<64x256xf32, #tpu.memory_space<vmem>>, vector<8x256xf32>
    %315 = arith.select %26, %313, %314 : vector<8x256xi1>, vector<8x256xf32>
    %316 = arith.addf %312, %315 : vector<8x256xf32>
    %317 = vector.extract_strided_slice %316 {offsets = [0, 0], sizes = [8, 192], strides = [1, 1]} : vector<8x256xf32> to vector<8x192xf32>
    %cst_136 = arith.constant 5.000000e-01 : f32
    %318 = vector.broadcast %cst_136 : f32 to vector<8x192xf32>
    %319 = arith.mulf %318, %317 : vector<8x192xf32>
    %320 = math.tanh %319 : vector<8x192xf32>
    %cst_137 = arith.constant 5.000000e-01 : f32
    %321 = vector.broadcast %cst_137 : f32 to vector<8x192xf32>
    %322 = arith.mulf %321, %320 : vector<8x192xf32>
    %cst_138 = arith.constant 5.000000e-01 : f32
    %323 = vector.broadcast %cst_138 : f32 to vector<8x192xf32>
    %324 = arith.addf %322, %323 : vector<8x192xf32>
    %325 = vector.extract_strided_slice %316 {offsets = [0, 192], sizes = [8, 64], strides = [1, 1]} : vector<8x256xf32> to vector<8x64xf32>
    %326 = math.tanh %325 : vector<8x64xf32>
    %327 = vector.extract_strided_slice %324 {offsets = [0, 64], sizes = [8, 64], strides = [1, 1]} : vector<8x192xf32> to vector<8x64xf32>
    %328 = arith.mulf %327, %308 : vector<8x64xf32>
    %329 = vector.extract_strided_slice %324 {offsets = [0, 0], sizes = [8, 64], strides = [1, 1]} : vector<8x192xf32> to vector<8x64xf32>
    %330 = arith.mulf %329, %326 : vector<8x64xf32>
    %331 = arith.addf %328, %330 : vector<8x64xf32>
    %332 = vector.extract_strided_slice %324 {offsets = [0, 128], sizes = [8, 64], strides = [1, 1]} : vector<8x192xf32> to vector<8x64xf32>
    %333 = math.tanh %331 : vector<8x64xf32>
    %334 = arith.mulf %332, %333 : vector<8x64xf32>
    %cst_139 = arith.constant dense<0.000000e+00> : vector<8x256xf32>
    %335 = tpu.matmul %334, %263, %cst_139 {dimension_numbers = #tpu.dot_dimension_numbers<[1], [0], [0], [1], [0, 0, 1, 1], [], []>} : vector<8x64xf32>, vector<64x256xf32>, vector<8x256xf32> -> vector<8x256xf32>
    %c24_140 = arith.constant 24 : index
    %c0_141 = arith.constant 0 : index
    %336 = vector.load %arg10[%c24_140, %c0_141] : memref<64x256xf32, #tpu.memory_space<vmem>>, vector<8x256xf32>
    %c32_142 = arith.constant 32 : index
    %c0_143 = arith.constant 0 : index
    %337 = vector.load %arg10[%c32_142, %c0_143] : memref<64x256xf32, #tpu.memory_space<vmem>>, vector<8x256xf32>
    %338 = arith.select %26, %336, %337 : vector<8x256xi1>, vector<8x256xf32>
    %339 = arith.addf %335, %338 : vector<8x256xf32>
    %340 = vector.extract_strided_slice %339 {offsets = [0, 0], sizes = [8, 192], strides = [1, 1]} : vector<8x256xf32> to vector<8x192xf32>
    %cst_144 = arith.constant 5.000000e-01 : f32
    %341 = vector.broadcast %cst_144 : f32 to vector<8x192xf32>
    %342 = arith.mulf %341, %340 : vector<8x192xf32>
    %343 = math.tanh %342 : vector<8x192xf32>
    %cst_145 = arith.constant 5.000000e-01 : f32
    %344 = vector.broadcast %cst_145 : f32 to vector<8x192xf32>
    %345 = arith.mulf %344, %343 : vector<8x192xf32>
    %cst_146 = arith.constant 5.000000e-01 : f32
    %346 = vector.broadcast %cst_146 : f32 to vector<8x192xf32>
    %347 = arith.addf %345, %346 : vector<8x192xf32>
    %348 = vector.extract_strided_slice %339 {offsets = [0, 192], sizes = [8, 64], strides = [1, 1]} : vector<8x256xf32> to vector<8x64xf32>
    %349 = math.tanh %348 : vector<8x64xf32>
    %350 = vector.extract_strided_slice %347 {offsets = [0, 64], sizes = [8, 64], strides = [1, 1]} : vector<8x192xf32> to vector<8x64xf32>
    %351 = arith.mulf %350, %331 : vector<8x64xf32>
    %352 = vector.extract_strided_slice %347 {offsets = [0, 0], sizes = [8, 64], strides = [1, 1]} : vector<8x192xf32> to vector<8x64xf32>
    %353 = arith.mulf %352, %349 : vector<8x64xf32>
    %354 = arith.addf %351, %353 : vector<8x64xf32>
    %355 = vector.extract_strided_slice %347 {offsets = [0, 128], sizes = [8, 64], strides = [1, 1]} : vector<8x192xf32> to vector<8x64xf32>
    %356 = math.tanh %354 : vector<8x64xf32>
    %357 = arith.mulf %355, %356 : vector<8x64xf32>
    %cst_147 = arith.constant dense<0.000000e+00> : vector<8x256xf32>
    %358 = tpu.matmul %357, %263, %cst_147 {dimension_numbers = #tpu.dot_dimension_numbers<[1], [0], [0], [1], [0, 0, 1, 1], [], []>} : vector<8x64xf32>, vector<64x256xf32>, vector<8x256xf32> -> vector<8x256xf32>
    %c32_148 = arith.constant 32 : index
    %c0_149 = arith.constant 0 : index
    %359 = vector.load %arg10[%c32_148, %c0_149] : memref<64x256xf32, #tpu.memory_space<vmem>>, vector<8x256xf32>
    %c24_150 = arith.constant 24 : index
    %c0_151 = arith.constant 0 : index
    %360 = vector.load %arg10[%c24_150, %c0_151] : memref<64x256xf32, #tpu.memory_space<vmem>>, vector<8x256xf32>
    %361 = arith.select %26, %359, %360 : vector<8x256xi1>, vector<8x256xf32>
    %362 = arith.addf %358, %361 : vector<8x256xf32>
    %363 = vector.extract_strided_slice %362 {offsets = [0, 0], sizes = [8, 192], strides = [1, 1]} : vector<8x256xf32> to vector<8x192xf32>
    %cst_152 = arith.constant 5.000000e-01 : f32
    %364 = vector.broadcast %cst_152 : f32 to vector<8x192xf32>
    %365 = arith.mulf %364, %363 : vector<8x192xf32>
    %366 = math.tanh %365 : vector<8x192xf32>
    %cst_153 = arith.constant 5.000000e-01 : f32
    %367 = vector.broadcast %cst_153 : f32 to vector<8x192xf32>
    %368 = arith.mulf %367, %366 : vector<8x192xf32>
    %cst_154 = arith.constant 5.000000e-01 : f32
    %369 = vector.broadcast %cst_154 : f32 to vector<8x192xf32>
    %370 = arith.addf %368, %369 : vector<8x192xf32>
    %371 = vector.extract_strided_slice %362 {offsets = [0, 192], sizes = [8, 64], strides = [1, 1]} : vector<8x256xf32> to vector<8x64xf32>
    %372 = math.tanh %371 : vector<8x64xf32>
    %373 = vector.extract_strided_slice %370 {offsets = [0, 64], sizes = [8, 64], strides = [1, 1]} : vector<8x192xf32> to vector<8x64xf32>
    %374 = arith.mulf %373, %354 : vector<8x64xf32>
    %375 = vector.extract_strided_slice %370 {offsets = [0, 0], sizes = [8, 64], strides = [1, 1]} : vector<8x192xf32> to vector<8x64xf32>
    %376 = arith.mulf %375, %372 : vector<8x64xf32>
    %377 = arith.addf %374, %376 : vector<8x64xf32>
    %378 = vector.extract_strided_slice %370 {offsets = [0, 128], sizes = [8, 64], strides = [1, 1]} : vector<8x192xf32> to vector<8x64xf32>
    %379 = math.tanh %377 : vector<8x64xf32>
    %380 = arith.mulf %378, %379 : vector<8x64xf32>
    %cst_155 = arith.constant dense<0.000000e+00> : vector<8x256xf32>
    %381 = tpu.matmul %380, %263, %cst_155 {dimension_numbers = #tpu.dot_dimension_numbers<[1], [0], [0], [1], [0, 0, 1, 1], [], []>} : vector<8x64xf32>, vector<64x256xf32>, vector<8x256xf32> -> vector<8x256xf32>
    %c40_156 = arith.constant 40 : index
    %c0_157 = arith.constant 0 : index
    %382 = vector.load %arg10[%c40_156, %c0_157] : memref<64x256xf32, #tpu.memory_space<vmem>>, vector<8x256xf32>
    %c16_158 = arith.constant 16 : index
    %c0_159 = arith.constant 0 : index
    %383 = vector.load %arg10[%c16_158, %c0_159] : memref<64x256xf32, #tpu.memory_space<vmem>>, vector<8x256xf32>
    %384 = arith.select %26, %382, %383 : vector<8x256xi1>, vector<8x256xf32>
    %385 = arith.addf %381, %384 : vector<8x256xf32>
    %386 = vector.extract_strided_slice %385 {offsets = [0, 0], sizes = [8, 192], strides = [1, 1]} : vector<8x256xf32> to vector<8x192xf32>
    %cst_160 = arith.constant 5.000000e-01 : f32
    %387 = vector.broadcast %cst_160 : f32 to vector<8x192xf32>
    %388 = arith.mulf %387, %386 : vector<8x192xf32>
    %389 = math.tanh %388 : vector<8x192xf32>
    %cst_161 = arith.constant 5.000000e-01 : f32
    %390 = vector.broadcast %cst_161 : f32 to vector<8x192xf32>
    %391 = arith.mulf %390, %389 : vector<8x192xf32>
    %cst_162 = arith.constant 5.000000e-01 : f32
    %392 = vector.broadcast %cst_162 : f32 to vector<8x192xf32>
    %393 = arith.addf %391, %392 : vector<8x192xf32>
    %394 = vector.extract_strided_slice %385 {offsets = [0, 192], sizes = [8, 64], strides = [1, 1]} : vector<8x256xf32> to vector<8x64xf32>
    %395 = math.tanh %394 : vector<8x64xf32>
    %396 = vector.extract_strided_slice %393 {offsets = [0, 64], sizes = [8, 64], strides = [1, 1]} : vector<8x192xf32> to vector<8x64xf32>
    %397 = arith.mulf %396, %377 : vector<8x64xf32>
    %398 = vector.extract_strided_slice %393 {offsets = [0, 0], sizes = [8, 64], strides = [1, 1]} : vector<8x192xf32> to vector<8x64xf32>
    %399 = arith.mulf %398, %395 : vector<8x64xf32>
    %400 = arith.addf %397, %399 : vector<8x64xf32>
    %401 = vector.extract_strided_slice %393 {offsets = [0, 128], sizes = [8, 64], strides = [1, 1]} : vector<8x192xf32> to vector<8x64xf32>
    %402 = math.tanh %400 : vector<8x64xf32>
    %403 = arith.mulf %401, %402 : vector<8x64xf32>
    %cst_163 = arith.constant dense<0.000000e+00> : vector<8x256xf32>
    %404 = tpu.matmul %403, %263, %cst_163 {dimension_numbers = #tpu.dot_dimension_numbers<[1], [0], [0], [1], [0, 0, 1, 1], [], []>} : vector<8x64xf32>, vector<64x256xf32>, vector<8x256xf32> -> vector<8x256xf32>
    %c48_164 = arith.constant 48 : index
    %c0_165 = arith.constant 0 : index
    %405 = vector.load %arg10[%c48_164, %c0_165] : memref<64x256xf32, #tpu.memory_space<vmem>>, vector<8x256xf32>
    %c8_166 = arith.constant 8 : index
    %c0_167 = arith.constant 0 : index
    %406 = vector.load %arg10[%c8_166, %c0_167] : memref<64x256xf32, #tpu.memory_space<vmem>>, vector<8x256xf32>
    %407 = arith.select %26, %405, %406 : vector<8x256xi1>, vector<8x256xf32>
    %408 = arith.addf %404, %407 : vector<8x256xf32>
    %409 = vector.extract_strided_slice %408 {offsets = [0, 0], sizes = [8, 192], strides = [1, 1]} : vector<8x256xf32> to vector<8x192xf32>
    %cst_168 = arith.constant 5.000000e-01 : f32
    %410 = vector.broadcast %cst_168 : f32 to vector<8x192xf32>
    %411 = arith.mulf %410, %409 : vector<8x192xf32>
    %412 = math.tanh %411 : vector<8x192xf32>
    %cst_169 = arith.constant 5.000000e-01 : f32
    %413 = vector.broadcast %cst_169 : f32 to vector<8x192xf32>
    %414 = arith.mulf %413, %412 : vector<8x192xf32>
    %cst_170 = arith.constant 5.000000e-01 : f32
    %415 = vector.broadcast %cst_170 : f32 to vector<8x192xf32>
    %416 = arith.addf %414, %415 : vector<8x192xf32>
    %417 = vector.extract_strided_slice %408 {offsets = [0, 192], sizes = [8, 64], strides = [1, 1]} : vector<8x256xf32> to vector<8x64xf32>
    %418 = math.tanh %417 : vector<8x64xf32>
    %419 = vector.extract_strided_slice %416 {offsets = [0, 64], sizes = [8, 64], strides = [1, 1]} : vector<8x192xf32> to vector<8x64xf32>
    %420 = arith.mulf %419, %400 : vector<8x64xf32>
    %421 = vector.extract_strided_slice %416 {offsets = [0, 0], sizes = [8, 64], strides = [1, 1]} : vector<8x192xf32> to vector<8x64xf32>
    %422 = arith.mulf %421, %418 : vector<8x64xf32>
    %423 = arith.addf %420, %422 : vector<8x64xf32>
    %424 = vector.extract_strided_slice %416 {offsets = [0, 128], sizes = [8, 64], strides = [1, 1]} : vector<8x192xf32> to vector<8x64xf32>
    %425 = math.tanh %423 : vector<8x64xf32>
    %426 = arith.mulf %424, %425 : vector<8x64xf32>
    %cst_171 = arith.constant dense<0.000000e+00> : vector<8x256xf32>
    %427 = tpu.matmul %426, %263, %cst_171 {dimension_numbers = #tpu.dot_dimension_numbers<[1], [0], [0], [1], [0, 0, 1, 1], [], []>} : vector<8x64xf32>, vector<64x256xf32>, vector<8x256xf32> -> vector<8x256xf32>
    %c56_172 = arith.constant 56 : index
    %c0_173 = arith.constant 0 : index
    %428 = vector.load %arg10[%c56_172, %c0_173] : memref<64x256xf32, #tpu.memory_space<vmem>>, vector<8x256xf32>
    %c0_174 = arith.constant 0 : index
    %c0_175 = arith.constant 0 : index
    %429 = vector.load %arg10[%c0_174, %c0_175] : memref<64x256xf32, #tpu.memory_space<vmem>>, vector<8x256xf32>
    %430 = arith.select %26, %428, %429 : vector<8x256xi1>, vector<8x256xf32>
    %431 = arith.addf %427, %430 : vector<8x256xf32>
    %432 = vector.extract_strided_slice %431 {offsets = [0, 0], sizes = [8, 192], strides = [1, 1]} : vector<8x256xf32> to vector<8x192xf32>
    %cst_176 = arith.constant 5.000000e-01 : f32
    %433 = vector.broadcast %cst_176 : f32 to vector<8x192xf32>
    %434 = arith.mulf %433, %432 : vector<8x192xf32>
    %435 = math.tanh %434 : vector<8x192xf32>
    %cst_177 = arith.constant 5.000000e-01 : f32
    %436 = vector.broadcast %cst_177 : f32 to vector<8x192xf32>
    %437 = arith.mulf %436, %435 : vector<8x192xf32>
    %cst_178 = arith.constant 5.000000e-01 : f32
    %438 = vector.broadcast %cst_178 : f32 to vector<8x192xf32>
    %439 = arith.addf %437, %438 : vector<8x192xf32>
    %440 = vector.extract_strided_slice %431 {offsets = [0, 192], sizes = [8, 64], strides = [1, 1]} : vector<8x256xf32> to vector<8x64xf32>
    %441 = math.tanh %440 : vector<8x64xf32>
    %442 = vector.extract_strided_slice %439 {offsets = [0, 64], sizes = [8, 64], strides = [1, 1]} : vector<8x192xf32> to vector<8x64xf32>
    %443 = arith.mulf %442, %423 : vector<8x64xf32>
    %444 = vector.extract_strided_slice %439 {offsets = [0, 0], sizes = [8, 64], strides = [1, 1]} : vector<8x192xf32> to vector<8x64xf32>
    %445 = arith.mulf %444, %441 : vector<8x64xf32>
    %446 = arith.addf %443, %445 : vector<8x64xf32>
    %447 = vector.extract_strided_slice %439 {offsets = [0, 128], sizes = [8, 64], strides = [1, 1]} : vector<8x192xf32> to vector<8x64xf32>
    %448 = math.tanh %446 : vector<8x64xf32>
    %449 = arith.mulf %447, %448 : vector<8x64xf32>
    %450 = arith.select %29, %449, %288 : vector<8x64xi1>, vector<8x64xf32>
    %c0_179 = arith.constant 0 : index
    %c0_180 = arith.constant 0 : index
    %451 = vector.load %arg7[%c0_179, %c0_180] : memref<64x1xf32, #tpu.memory_space<vmem>>, vector<64x1xf32>
    %cst_181 = arith.constant dense<0.000000e+00> : vector<8x1xf32>
    %452 = tpu.matmul %450, %451, %cst_181 {dimension_numbers = #tpu.dot_dimension_numbers<[1], [0], [0], [1], [0, 0, 1, 1], [], []>} : vector<8x64xf32>, vector<64x1xf32>, vector<8x1xf32> -> vector<8x1xf32>
    %c0_182 = arith.constant 0 : index
    %c0_183 = arith.constant 0 : index
    %453 = vector.load %arg8[%c0_182, %c0_183] : memref<1x1xf32, #tpu.memory_space<vmem>>, vector<1x1xf32>
    %454 = vector.broadcast %453 : vector<1x1xf32> to vector<8x1xf32>
    %455 = arith.addf %452, %454 : vector<8x1xf32>
    %c0_184 = arith.constant 0 : index
    %c0_185 = arith.constant 0 : index
    %456 = vector.load %arg9[%c0_184, %c0_185] : memref<8x1xf32, #tpu.memory_space<vmem>>, vector<8x1xf32>
    tpu.vector_store %arg9[%c0_184, %c0_185], %455 {strides = array<i32>} : memref<8x1xf32, #tpu.memory_space<vmem>>, vector<8x1xf32>,
    return
  }
}

</mosaic_0001>

<bundles_post_ra>
// kernel: lstm_model_multistep_forward.1
= control target key start
LH: loop header
LB: loop body
LE: loop exit
PB: predicated region body
PF: predicated region fallthrough
CT: control target
= control target key end

     0   :  { %s3642_s0 = inlined_call_operand.vmem [shape: f32[64,7], index: 0, kind: input, shape index: {}]   ;;  %s3643_s1 = inlined_call_operand.hbm [shape: f32[7,256], index: 1, kind: input, shape index: {}]   ;;  %s3644_s2 = inlined_call_operand.vmem [shape: f32[64,256], index: 2, kind: input, shape index: {}]   ;;  %s3645_s3 = inlined_call_operand.hbm [shape: f32[1,256], index: 3, kind: input, shape index: {}]   ;;  %s3646_s4 = inlined_call_operand.vmem [shape: f32[64,256], index: 4, kind: input, shape index: {}]   ;;  %s3647_s5 = inlined_call_operand.hbm [shape: f32[64,256], index: 5, kind: input, shape index: {}]   ;;  %s3648_s6 = inlined_call_operand.hbm [shape: f32[1,256], index: 6, kind: input, shape index: {}]   ;;  %s3649_s7 = inlined_call_operand.vmem [shape: f32[64,1], index: 7, kind: input, shape index: {}]   ;;  %s3650_s8 = inlined_call_operand.<no memory space> [shape: f32[1,1], index: 8, kind: input, shape index: {}]   ;;  %s3651_s9 = inlined_call_operand.vmem [shape: f32[8,1], index: 9, kind: output, shape index: {}]  }
   0x1   :  { %v14_v0 = vstv %s3650_s8 }
   0x2   :  { %15 = vst [vmem:[#allocation4] sm:$0x1] %v14_v0 }
   0x3   :  { %16 = vsyncpa [#allocation6], 0 }
   0x4   :  { %17 = vsyncpa [#allocation8], 0 }
   0x5   :  { %18 = vsyncpa [#allocation11], 0  ;;  %s2603_s11 = smov [#allocation7]   ;;  %s2604_s13 = smov [#allocation5]  }
   0x6   :  { %s39_s12 = sshll.u32 %s2603_s11, 4  ;;  %s27_s14 = sshll.u32 %s2604_s13, 4  ;;  %s40_s12 = int_to_ptr.vmem [resolvable:$true] %s39_s12  ;;  %s28_s14 = int_to_ptr.vmem [resolvable:$true] %s27_s14 }
   0x7   :  { %s2525_s15 = scalar_lea.vmem %s40_s12, 32  ;;  %p2530_p1 = scmp.lt.s32.totalorder %s40_s12, %s40_s12 }
   0x8   :  { %p2526_p0 = scmp.ne.s32.totalorder %s40_s12, %s2525_s15  ;;  %p2531_p2 = scmp.lt.s32.totalorder %s2525_s15, %s2525_s15 }
   0xa   :  { %p2532_p3 = por %p2531_p2, %p2530_p1 }
   0xc   :  { %p2533_p4 = pnand %p2532_p3, %p2526_p0 }
   0xe   :  { %2536 = shalt.err (!%p2533_p4)
}
   0xf   :  { %42 = dma.hbm_to_vmem [thread:$0]  %s3645_s3, 32, %s40_s12, [#allocation8]  }
  0x10   :  { %s2545_s8 = scalar_lea.vmem %s28_s14, 256  ;;  %p2550_p6 = scmp.lt.s32.totalorder %s28_s14, %s28_s14 }
  0x11   :  { %p2546_p5 = scmp.ne.s32.totalorder %s28_s14, %s2545_s8  ;;  %p2551_p7 = scmp.lt.s32.totalorder %s2545_s8, %s2545_s8 }
  0x13   :  { %p2552_p8 = por %p2551_p7, %p2550_p6 }
  0x15   :  { %p2553_p9 = pnand %p2552_p8, %p2546_p5 }
  0x17   :  { %2556 = shalt.err (!%p2553_p9)
}
  0x18   :  { %30 = dma.hbm_to_vmem [thread:$0]  %s3643_s1, 256, %s28_s14, [#allocation6]  }
  0x19   :  { %s2605_s20 = smov [#allocation9]  }
  0x1a   :  { %s50_s21 = sshll.u32 %s2605_s20, 4  ;;  %s51_s21 = int_to_ptr.vmem [resolvable:$true] %s50_s21 }
  0x1b   :  { %s2565_s22 = scalar_lea.vmem %s51_s21, 2048  ;;  %p2570_p11 = scmp.lt.s32.totalorder %s51_s21, %s51_s21 }
  0x1c   :  { %p2566_p10 = scmp.ne.s32.totalorder %s51_s21, %s2565_s22  ;;  %p2571_p12 = scmp.lt.s32.totalorder %s2565_s22, %s2565_s22 }
  0x1e   :  { %p2572_p13 = por %p2571_p12, %p2570_p11 }
  0x20   :  { %p2573_p0 = pnand %p2572_p13, %p2566_p10 }
  0x22   :  { %2576 = shalt.err (!%p2573_p0)
}
  0x23   :  { %s2606_s3 = smov 256   ;;  %s2607_s23 = smov 16  }
  0x24   :  { %56 = dma.hbm_to_vmem [thread:$0]  %s3647_s5, 2048, %s51_s21, [#allocation8], %s2606_s3, %s2606_s3, %s2607_s23  }
  0x25   :  { %s2608_s26 = smov [#allocation10]  }
  0x26   :  { %s63_s27 = sshll.u32 %s2608_s26, 4  ;;  %s64_s27 = int_to_ptr.vmem [resolvable:$true] %s63_s27 }
  0x27   :  { %s2585_s1 = scalar_lea.vmem %s64_s27, 32  ;;  %p2590_p2 = scmp.lt.s32.totalorder %s64_s27, %s64_s27 }
  0x28   :  { %p2586_p1 = scmp.ne.s32.totalorder %s64_s27, %s2585_s1  ;;  %p2591_p3 = scmp.lt.s32.totalorder %s2585_s1, %s2585_s1 }
  0x2a   :  { %p2592_p4 = por %p2591_p3, %p2590_p2 }
  0x2c   :  { %p2593_p5 = pnand %p2592_p4, %p2586_p1 }
  0x2e   :  { %2596 = shalt.err (!%p2593_p5)
}
  0x2f   :  { %66 = dma.hbm_to_vmem [thread:$0]  %s3648_s6, 32, %s64_s27, [#allocation11]  }
  0x30   :  { %2597 = dma.done.wait [#allocation6], 256  }
  0x31   :  { %2598 = vsyncadd [#allocation6], 4294967040 }
  0x32   :  { %2599 = dma.done.wait [#allocation8], 2080  }
  0x33   :  { %2600 = vsyncadd [#allocation8], 4294965216 }
  0x34   :  { %2601 = dma.done.wait [#allocation11], 32  }
  0x35   :  { %2602 = vsyncadd [#allocation11], 4294967264  ;;  %v2609_v1 = vmov 0.0   ;;  %vm167_vm0 = vcmask 1046528   ;;  %v129_v2 = vld [vmem:[#allocation5 + $0x8] sm:$0x7f]  ;;  %v83_v28 = vlaneseq }
  0x36   :  { %238 = vmatprep.mubr.f32.mxu0 %v2609_v1  ;;  %393 = vmatprep.mubr.f32.mxu1 %v2609_v1  ;;  %v128_v3 = vld [vmem:[#allocation5] sm:$0x7f]  ;;  %vm142_vm1 = vcmask 56320   ;;  %v2685_v5 = vld [vmem:[%s3644_s2 + $0x78] sm:$0xff]  ;;  %v2690_v6 = vld [vmem:[%s3644_s2 + $0x70] sm:$0xff]  ;;  %vm426_vm12 = vcmask 261120  }
  0x37   :  { %v120_v4 = vld [vmem:[%s3642_s0] sm:$0xff]  ;;  %2318 = vmatprep.subr.msk.mxu0 %vm167_vm0, %v129_v2  ;;  %v2695_v7 = vld [vmem:[%s3644_s2 + $0x68] sm:$0xff]  ;;  %345 = vmatprep.subr.mxu1 %v2685_v5  ;;  %v2712_v10 = vld [vmem:[%s3644_s2 + $0x58] sm:$0xff]  ;;  %v2851_v29 = vshrl.u32 %v83_v28, 7  ;;  %v2859_v37 = vand.u32 127, %v83_v28  ;;  %vm428_vm13 = vcmask 523520  }
  0x38   :  { %2319 = vmatpush1.msk.msra.mxu0 %vm167_vm0, %v128_v3  ;;  %v2702_v8 = vld [vmem:[%s3644_s2 + $0x60] sm:$0xff]  ;;  %v121_v9 = vld [vmem:[%s3642_s0 + $0x8] sm:$0xff]  ;;  %346 = vmatpush1.msra.mxu1 %v2690_v6  ;;  %v2718_v11 = vld [vmem:[%s3644_s2 + $0x50] sm:$0xff]  ;;  %vm325_vm14 = vcmask 523264   ;;  %vm2611_vm15 = vmmov 0   ;;  %vm2309_vm0 = vcmask 7168  }
  0x39   :  { %2320 = vmatmul.mubr.msk.f32.vlgmr.msra.gmra.mxu0 %vm142_vm1, %v120_v4  ;;  %347 = vmatprep.subr.mxu1 %v2695_v7  ;;  %v2725_v12 = vld [vmem:[%s3644_s2 + $0x48] sm:$0xff]  ;;  %v2733_v13 = vld [vmem:[%s3644_s2 + $0x40] sm:$0xff]  ;;  %v122_v14 = vld [vmem:[%s3642_s0 + $0x10] sm:$0xff]  ;;  %v3653_v30 = vsub.s32 0, %v2851_v29  ;;  %v3652_v35 = vsub.s32 1, %v2851_v29  ;;  %v85_v43 = vadd.s32 128, %v2859_v37 }
  0x3a   :  { %244 = vmatprep.mubr.f32.mxu0 %v2609_v1  ;;  %563 = vmatprep.subr.mxu0 %v2685_v5  ;;  %v2743_v15 = vld [vmem:[%s3644_s2 + $0x38] sm:$0xff]  ;;  %v2749_v16 = vld [vmem:[%s3644_s2 + $0x30] sm:$0xff]  ;;  %v2756_v17 = vld [vmem:[%s3644_s2 + $0x28] sm:$0xff]  ;;  %vm96_vm2 = vcmp.ge.s32.totalorder %v2859_v37, 64  ;;  %vm98_vm3 = vcmp.lt.s32.totalorder %v2859_v37, 96  ;;  %vm90_vm6 = vcmp.lt.s32.totalorder %v2859_v37, 32 }
  0x3b   :  { %348 = vmatpush1.msra.mxu1 %v2702_v8  ;;  %564 = vmatpush1.msra.mxu0 %v2690_v6  ;;  %v2764_v18 = vld [vmem:[%s3644_s2 + $0x20] sm:$0xff]  ;;  %v123_v19 = vld [vmem:[%s3642_s0 + $0x18] sm:$0xff]  ;;  %v2780_v21 = vld [vmem:[%s3644_s2 + $0x10] sm:$0xff]  ;;  %vm113_vm4 = vcmp.ge.s32.totalorder %v85_v43, 192  ;;  %vm115_vm5 = vcmp.lt.s32.totalorder %v85_v43, 224  ;;  %vm107_vm8 = vcmp.lt.s32.totalorder %v85_v43, 160 }
  0x3c   :  { %349 = vmatprep.subr.mxu1 %v2712_v10  ;;  %565 = vmatprep.subr.mxu0 %v2695_v7  ;;  %v2774_v20 = vld [vmem:[%s3644_s2 + $0x18] sm:$0xff]  ;;  %v2787_v22 = vld [vmem:[%s3644_s2 + $0x8] sm:$0xff]  ;;  %v2795_v23 = vld [vmem:[%s3644_s2] sm:$0xff] }
  0x3d   :  { %2321 = vmatmul.mubr.msk.f32.gmra.mxu0 %vm142_vm1, %v121_v9  ;;  %350 = vmatpush1.msra.mxu1 %v2718_v11  ;;  %v124_v24 = vld [vmem:[%s3642_s0 + $0x20] sm:$0xff]  ;;  %v125_v25 = vld [vmem:[%s3642_s0 + $0x28] sm:$0xff]  ;;  %v126_v26 = vld [vmem:[%s3642_s0 + $0x30] sm:$0xff] }
  0x3e   :  { %250 = vmatprep.mubr.f32.mxu0 %v2609_v1  ;;  %351 = vmatprep.subr.mxu1 %v2725_v12  ;;  %v127_v27 = vld [vmem:[%s3642_s0 + $0x38] sm:$0xff]  ;;  %v130_v31 = vld [vmem:[#allocation7] sm:$0x3]  ;;  %vm100_vm7 = vmand %vm96_vm2, %vm98_vm3  ;;  %s2610_s0 = smov 64  }
  0x3f   :  { %352 = vmatpush1.msra.mxu1 %v2733_v13  ;;  %566 = vmatpush1.msra.mxu0 %v2702_v8  ;;  %v135_v32 = vrot.slane %v130_v31, %v3653_v30  ;;  %v139_v39 = vrot.slane %v130_v31, %v3652_v35  ;;  %vm117_vm9 = vmand %vm113_vm4, %vm115_vm5  ;;  %v2228_v55 = vld [vmem:[%s3649_s7 + $0x38] sm:$0xff] }
  0x40   :  { %353 = vmatprep.subr.mxu1 %v2743_v15  ;;  %567 = vmatprep.subr.mxu0 %v2712_v10  ;;  %vm2881_vm10 = vmor %vm90_vm6, %vm100_vm7 }
  0x41   :  { %2322 = vmatmul.mubr.msk.f32.gmra.mxu0 %vm142_vm1, %v122_v14  ;;  %354 = vmatpush1.msra.mxu1 %v2749_v16  ;;  %vm2887_vm11 = vmor %vm107_vm8, %vm117_vm9 }
  0x42   :  { %256 = vmatprep.mubr.f32.mxu0 %v2609_v1  ;;  %355 = vmatprep.subr.mxu1 %v2756_v17 }
  0x43   :  { %356 = vmatpush1.msra.mxu1 %v2764_v18  ;;  %568 = vmatpush1.msra.mxu0 %v2718_v11 }
  0x44   :  { %357 = vmatprep.subr.mxu1 %v2774_v20  ;;  %569 = vmatprep.subr.mxu0 %v2725_v12 }
  0x45   :  { %2323 = vmatmul.mubr.msk.f32.gmra.mxu0 %vm142_vm1, %v123_v19  ;;  %358 = vmatpush1.msra.mxu1 %v2780_v21 }
  0x46   :  { %262 = vmatprep.mubr.f32.mxu0 %v2609_v1  ;;  %359 = vmatprep.subr.mxu1 %v2787_v22 }
  0x47   :  { %360 = vmatpush1.msra.mxu1 %v2795_v23  ;;  %570 = vmatpush1.msra.mxu0 %v2733_v13 }
  0x48   :  { %394 = vmatmul.mubr.f32.vlgmr.msra.gmra.mxu1 %v2609_v1  ;;  %455 = vmatprep.subr.mxu1 %v2685_v5 }
  0x49   :  { %2324 = vmatmul.mubr.msk.f32.gmra.mxu0 %vm142_vm1, %v124_v24  ;;  %456 = vmatpush1.msra.mxu1 %v2690_v6 }
  0x4a   :  { %268 = vmatprep.mubr.f32.mxu0 %v2609_v1  ;;  %503 = vmatprep.mubr.f32.mxu1 %v2609_v1 }
  0x4b   :  { %457 = vmatprep.subr.mxu1 %v2695_v7  ;;  %571 = vmatprep.subr.mxu0 %v2743_v15 }
  0x4c   :  { %458 = vmatpush1.msra.mxu1 %v2702_v8  ;;  %572 = vmatpush1.msra.mxu0 %v2749_v16 }
  0x4d   :  { %2325 = vmatmul.mubr.msk.f32.gmra.mxu0 %vm142_vm1, %v125_v25  ;;  %459 = vmatprep.subr.mxu1 %v2712_v10 }
  0x4e   :  { %274 = vmatprep.mubr.f32.mxu0 %v2609_v1  ;;  %460 = vmatpush1.msra.mxu1 %v2718_v11 }
  0x4f   :  { %461 = vmatprep.subr.mxu1 %v2725_v12  ;;  %573 = vmatprep.subr.mxu0 %v2756_v17 }
  0x50   :  { %462 = vmatpush1.msra.mxu1 %v2733_v13  ;;  %574 = vmatpush1.msra.mxu0 %v2764_v18 }
  0x51   :  { %2326 = vmatmul.mubr.msk.f32.gmra.mxu0 %vm142_vm1, %v126_v26  ;;  %463 = vmatprep.subr.mxu1 %v2743_v15 }
  0x52   :  { %280 = vmatprep.mubr.f32.mxu0 %v2609_v1  ;;  %464 = vmatpush1.msra.mxu1 %v2749_v16 }
  0x53   :  { %465 = vmatprep.subr.mxu1 %v2756_v17  ;;  %575 = vmatprep.subr.mxu0 %v2774_v20 }
  0x54   :  { %466 = vmatpush1.msra.mxu1 %v2764_v18  ;;  %576 = vmatpush1.msra.mxu0 %v2780_v21 }
  0x55   :  { %2327 = vmatmul.mubr.msk.f32.gmra.mxu0 %vm142_vm1, %v127_v27  ;;  %467 = vmatprep.subr.mxu1 %v2774_v20 }
  0x56   :  { %468 = vmatpush1.msra.mxu1 %v2780_v21  ;;  %577 = vmatprep.subr.mxu0 %v2787_v22 }
  0x57   :  { %469 = vmatprep.subr.mxu1 %v2787_v22  ;;  %578 = vmatpush1.msra.mxu0 %v2795_v23 }
  0x58   :  { %470 = vmatpush1.msra.mxu1 %v2795_v23  ;;  %611 = vmatprep.mubr.f32.mxu0 %v2609_v1 }
  0x59   :  { %671 = vmatprep.subr.mxu1 %v2685_v5  ;;  %779 = vmatprep.subr.mxu0 %v2685_v5 }
  0xf9   :  { %v240_v33 = vpop.f32.mrf.mxu0 }
  0xfa   :  { %v2856_v34 = vadd.f32 %v240_v33, %v135_v32 }
  0xfb   :  { %v242_v36 = vpop.f32.mrf.mxu0 }
  0xfd   :  { %v246_v38 = vpop.f32.mrf.mxu0 }
  0xfe   :  { %v2863_v40 = vadd.f32 %v246_v38, %v135_v32 }
  0xff   :  { %v248_v41 = vpop.f32.mrf.mxu0 }
 0x100   :  { %v2865_v42 = vadd.f32 %v248_v41, %v139_v39 }
 0x101   :  { %v252_v44 = vpop.f32.mrf.mxu0 }
 0x102   :  { %v2868_v45 = vadd.f32 %v252_v44, %v135_v32 }
 0x103   :  { %v254_v46 = vpop.f32.mrf.mxu0 }
 0x104   :  { %v2872_v47 = vadd.f32 %v254_v46, %v139_v39  ;;  %v2951_v46 = vadd.f32 %v242_v36, %v139_v39 }
 0x105   :  { %v258_v48 = vpop.f32.mrf.mxu0 }
 0x106   :  { %v2875_v49 = vadd.f32 %v258_v48, %v135_v32 }
 0x107   :  { %v260_v50 = vpop.f32.mrf.mxu0 }
 0x108   :  { %v2877_v51 = vadd.f32 %v260_v50, %v139_v39  ;;  %v395_v38 = vpop.f32.mrf.mxu1 }
 0x109   :  { %v264_v53 = vpop.f32.mrf.mxu0 }
 0x10a   :  { %v2885_v54 = vadd.f32 %v264_v53, %v135_v32  ;;  %v397_v36 = vpop.f32.mrf.mxu1 }
 0x10b   :  { %v266_v56 = vpop.f32.mrf.mxu0 }
 0x10c   :  { %v2891_v57 = vadd.f32 %v266_v56, %v139_v39  ;;  %v650_v58 = vsel %vm2881_vm10, %v2875_v49, %v2885_v54  ;;  %v758_v59 = vsel %vm2881_vm10, %v2885_v54, %v2875_v49 }
 0x10d   :  { %v270_v60 = vpop.f32.mrf.mxu0 }
 0x10e   :  { %v2901_v61 = vadd.f32 %v270_v60, %v135_v32  ;;  %v651_v62 = vsel %vm2887_vm11, %v2877_v51, %v2891_v57  ;;  %v759_v63 = vsel %vm2887_vm11, %v2891_v57, %v2877_v51 }
 0x10f   :  { %v272_v0 = vpop.f32.mrf.mxu0 }
 0x110   :  { %v2911_v2 = vadd.f32 %v272_v0, %v139_v39  ;;  %v542_v3 = vsel %vm2881_vm10, %v2868_v45, %v2901_v61  ;;  %v866_v4 = vsel %vm2881_vm10, %v2901_v61, %v2868_v45 }
 0x111   :  { %v276_v9 = vpop.f32.mrf.mxu0 }
 0x112   :  { %v2921_v14 = vadd.f32 %v276_v9, %v135_v32  ;;  %v543_v19 = vsel %vm2887_vm11, %v2872_v47, %v2911_v2  ;;  %v867_v24 = vsel %vm2887_vm11, %v2911_v2, %v2872_v47 }
 0x113   :  { %v278_v25 = vpop.f32.mrf.mxu0 }
 0x114   :  { %v2931_v26 = vadd.f32 %v278_v25, %v139_v39  ;;  %v434_v27 = vsel %vm2881_vm10, %v2863_v40, %v2921_v14  ;;  %v974_v28 = vsel %vm2881_vm10, %v2921_v14, %v2863_v40 }
 0x115   :  { %v282_v31 = vpop.f32.mrf.mxu0 }
 0x116   :  { %v2941_v33 = vadd.f32 %v282_v31, %v135_v32  ;;  %v435_v41 = vsel %vm2887_vm11, %v2865_v42, %v2931_v26  ;;  %v975_v43 = vsel %vm2887_vm11, %v2931_v26, %v2865_v42 }
 0x117   :  { %v284_v44 = vpop.f32.mrf.mxu0 }
 0x118   :  { %v323_v32 = vsel %vm2881_vm10, %v2856_v34, %v2941_v33  ;;  %v2957_v48 = vadd.f32 %v284_v44, %v139_v39 }
 0x119   :  { %v396_v53 = vadd.f32 %v395_v38, %v323_v32 }
 0x11a   :  { %v324_v56 = vsel %vm2887_vm11, %v2951_v46, %v2957_v48 }
 0x11b   :  { %v398_v0 = vadd.f32 %v397_v36, %v324_v56  ;;  %v400_v9 = vmul.f32 0.5, %v396_v53 }
 0x11d   :  { %2389 = vtanh.f32 %v398_v0  ;;  %v401_v56 = vmul.f32 0.5, %v398_v0 }
 0x11e   :  { %2391 = vtanh.f32 %v400_v9 }
 0x12a   :  { %v2390_v39 = vpop.eup %2389 }
 0x12b   :  { %411 = vrot.lane.b32.xlu0 %v2390_v39, %s2610_s0  ;;  %v2392_v25 = vpop.eup %2391 }
 0x12c   :  { %v404_v31 = vmul.f32 0.5, %v2392_v25 }
 0x12e   :  { %v406_v38 = vadd.f32 0.5, %v404_v31 }
 0x130   :  { %v409_v35 = vmul.f32 0.0, %v406_v38 }
 0x19d   :  { %v412_v44 = vpop.permute.xlu0 %411 }
 0x19e   :  { %v414_v32 = vmul.f32 %v412_v44, %v406_v38 }
 0x1a0   :  { %416 = vrot.lane.b32.xlu0 %v414_v32, %s2610_s0 }
 0x212   :  { %v417_v30 = vpop.permute.xlu0 %416 }
 0x213   :  { %v419_v50 = vadd.f32 %v417_v30, %v409_v35 }
 0x215   :  { %2393 = vtanh.f32 %v419_v50 }
 0x216   :  { %2395 = vtanh.f32 %v401_v56 }
 0x222   :  { %v2394_v60 = vpop.eup %2393 }
 0x223   :  { %422 = vrot.lane.b32.xlu1 %v2394_v60, %s2610_s0  ;;  %v2396_v36 = vpop.eup %2395 }
 0x224   :  { %v405_v39 = vmul.f32 0.5, %v2396_v36 }
 0x226   :  { %v407_v53 = vadd.f32 0.5, %v405_v39 }
 0x295   :  { %v423_v9 = vpop.permute.xlu1 %422 }
 0x296   :  { %v425_v25 = vmul.f32 %v423_v9, %v407_v53 }
 0x298   :  { %427 = vst.msk [vmem:[#allocation3] sm:$0xff] %vm426_vm12, %v425_v25  ;;  %2328 = vmatmul.mubr.msk.f32.vlgmr.msra.gmra.mxu1 %vm325_vm14, %v425_v25 }
 0x299   :  { %429 = vst.msk [vmem:[#allocation3 + $0x38] sm:$0xff] %vm428_vm13, %v425_v25  ;;  %672 = vmatpush1.msra.mxu1 %v2690_v6  ;;  %719 = vmatprep.mubr.f32.mxu1 %v2609_v1 }
 0x29a   :  { %673 = vmatprep.subr.mxu1 %v2695_v7 }
 0x29b   :  { %674 = vmatpush1.msra.mxu1 %v2702_v8 }
 0x29c   :  { %675 = vmatprep.subr.mxu1 %v2712_v10 }
 0x29d   :  { %676 = vmatpush1.msra.mxu1 %v2718_v11 }
 0x29e   :  { %677 = vmatprep.subr.mxu1 %v2725_v12 }
 0x29f   :  { %678 = vmatpush1.msra.mxu1 %v2733_v13 }
 0x2a0   :  { %679 = vmatprep.subr.mxu1 %v2743_v15 }
 0x2a1   :  { %680 = vmatpush1.msra.mxu1 %v2749_v16 }
 0x2a2   :  { %681 = vmatprep.subr.mxu1 %v2756_v17 }
 0x2a3   :  { %682 = vmatpush1.msra.mxu1 %v2764_v18 }
 0x2a4   :  { %683 = vmatprep.subr.mxu1 %v2774_v20 }
 0x2a5   :  { %684 = vmatpush1.msra.mxu1 %v2780_v21 }
 0x2a6   :  { %685 = vmatprep.subr.mxu1 %v2787_v22 }
 0x2a7   :  { %686 = vmatpush1.msra.mxu1 %v2795_v23 }
 0x2a8   :  { %887 = vmatprep.subr.mxu1 %v2685_v5 }
 0x358   :  { %v505_v30 = vpop.f32.mrf.mxu1 }
 0x359   :  { %v506_v35 = vadd.f32 %v505_v30, %v434_v27 }
 0x35a   :  { %v507_v60 = vpop.f32.mrf.mxu1 }
 0x35b   :  { %v508_v0 = vadd.f32 %v507_v60, %v435_v41  ;;  %v510_v38 = vmul.f32 0.5, %v506_v35 }
 0x35d   :  { %2397 = vtanh.f32 %v508_v0  ;;  %v511_v41 = vmul.f32 0.5, %v508_v0 }
 0x35e   :  { %2399 = vtanh.f32 %v510_v38 }
 0x36a   :  { %v2398_v31 = vpop.eup %2397 }
 0x36b   :  { %521 = vrot.lane.b32.xlu1 %v2398_v31, %s2610_s0  ;;  %v2400_v44 = vpop.eup %2399 }
 0x36c   :  { %v514_v32 = vmul.f32 0.5, %v2400_v44 }
 0x36e   :  { %v516_v56 = vadd.f32 0.5, %v514_v32 }
 0x370   :  { %v519_v27 = vmul.f32 %v516_v56, %v419_v50 }
 0x3dd   :  { %v522_v36 = vpop.permute.xlu1 %521 }
 0x3de   :  { %v524_v39 = vmul.f32 %v522_v36, %v516_v56 }
 0x3e0   :  { %526 = vrot.lane.b32.xlu0 %v524_v39, %s2610_s0 }
 0x452   :  { %v527_v53 = vpop.permute.xlu0 %526 }
 0x453   :  { %v529_v9 = vadd.f32 %v527_v53, %v519_v27 }
 0x455   :  { %2401 = vtanh.f32 %v529_v9 }
 0x456   :  { %2403 = vtanh.f32 %v511_v41 }
 0x462   :  { %v2402_v25 = vpop.eup %2401 }
 0x463   :  { %532 = vrot.lane.b32.xlu1 %v2402_v25, %s2610_s0  ;;  %v2404_v30 = vpop.eup %2403 }
 0x464   :  { %v515_v60 = vmul.f32 0.5, %v2404_v30 }
 0x466   :  { %v517_v35 = vadd.f32 0.5, %v515_v60 }
 0x4d5   :  { %v533_v31 = vpop.permute.xlu1 %532 }
 0x4d6   :  { %v535_v38 = vmul.f32 %v533_v31, %v517_v35 }
 0x4d8   :  { %536 = vst.msk [vmem:[#allocation3 + $0x8] sm:$0xff] %vm426_vm12, %v535_v38  ;;  %2329 = vmatmul.mubr.msk.f32.vlgmr.msra.gmra.mxu0 %vm325_vm14, %v535_v38 }
 0x4d9   :  { %537 = vst.msk [vmem:[#allocation3 + $0x30] sm:$0xff] %vm428_vm13, %v535_v38  ;;  %780 = vmatpush1.msra.mxu0 %v2690_v6  ;;  %827 = vmatprep.mubr.f32.mxu0 %v2609_v1 }
 0x4da   :  { %781 = vmatprep.subr.mxu0 %v2695_v7 }
 0x4db   :  { %782 = vmatpush1.msra.mxu0 %v2702_v8 }
 0x4dc   :  { %783 = vmatprep.subr.mxu0 %v2712_v10 }
 0x4dd   :  { %784 = vmatpush1.msra.mxu0 %v2718_v11 }
 0x4de   :  { %785 = vmatprep.subr.mxu0 %v2725_v12 }
 0x4df   :  { %786 = vmatpush1.msra.mxu0 %v2733_v13 }
 0x4e0   :  { %787 = vmatprep.subr.mxu0 %v2743_v15 }
 0x4e1   :  { %788 = vmatpush1.msra.mxu0 %v2749_v16 }
 0x4e2   :  { %789 = vmatprep.subr.mxu0 %v2756_v17 }
 0x4e3   :  { %790 = vmatpush1.msra.mxu0 %v2764_v18 }
 0x4e4   :  { %791 = vmatprep.subr.mxu0 %v2774_v20 }
 0x4e5   :  { %792 = vmatpush1.msra.mxu0 %v2780_v21 }
 0x4e6   :  { %793 = vmatprep.subr.mxu0 %v2787_v22 }
 0x4e7   :  { %794 = vmatpush1.msra.mxu0 %v2795_v23 }
 0x4e8   :  { %995 = vmatprep.subr.mxu0 %v2685_v5 }
 0x598   :  { %v613_v50 = vpop.f32.mrf.mxu0 }
 0x599   :  { %v614_v0 = vadd.f32 %v613_v50, %v542_v3 }
 0x59a   :  { %v615_v44 = vpop.f32.mrf.mxu0 }
 0x59b   :  { %v616_v32 = vadd.f32 %v615_v44, %v543_v19  ;;  %v618_v36 = vmul.f32 0.5, %v614_v0 }
 0x59d   :  { %2405 = vtanh.f32 %v616_v32  ;;  %v619_v19 = vmul.f32 0.5, %v616_v32 }
 0x59e   :  { %2407 = vtanh.f32 %v618_v36 }
 0x5aa   :  { %v2406_v56 = vpop.eup %2405 }
 0x5ab   :  { %629 = vrot.lane.b32.xlu0 %v2406_v56, %s2610_s0  ;;  %v2408_v39 = vpop.eup %2407 }
 0x5ac   :  { %v622_v27 = vmul.f32 0.5, %v2408_v39 }
 0x5ae   :  { %v624_v53 = vadd.f32 0.5, %v622_v27 }
 0x5b0   :  { %v627_v3 = vmul.f32 %v624_v53, %v529_v9 }
 0x61d   :  { %v630_v25 = vpop.permute.xlu0 %629 }
 0x61e   :  { %v632_v41 = vmul.f32 %v630_v25, %v624_v53 }
 0x620   :  { %634 = vrot.lane.b32.xlu1 %v632_v41, %s2610_s0 }
 0x692   :  { %v635_v30 = vpop.permute.xlu1 %634 }
 0x693   :  { %v637_v60 = vadd.f32 %v635_v30, %v627_v3 }
 0x695   :  { %2409 = vtanh.f32 %v637_v60 }
 0x696   :  { %2411 = vtanh.f32 %v619_v19 }
 0x6a2   :  { %v2410_v35 = vpop.eup %2409 }
 0x6a3   :  { %640 = vrot.lane.b32.xlu0 %v2410_v35, %s2610_s0  ;;  %v2412_v31 = vpop.eup %2411 }
 0x6a4   :  { %v623_v38 = vmul.f32 0.5, %v2412_v31 }
 0x6a6   :  { %v625_v50 = vadd.f32 0.5, %v623_v38 }
 0x715   :  { %v641_v0 = vpop.permute.xlu0 %640 }
 0x716   :  { %v643_v44 = vmul.f32 %v641_v0, %v625_v50 }
 0x718   :  { %644 = vst.msk [vmem:[#allocation3 + $0x10] sm:$0xff] %vm426_vm12, %v643_v44  ;;  %2330 = vmatmul.mubr.msk.f32.vlgmr.msra.gmra.mxu1 %vm325_vm14, %v643_v44 }
 0x719   :  { %645 = vst.msk [vmem:[#allocation3 + $0x28] sm:$0xff] %vm428_vm13, %v643_v44  ;;  %888 = vmatpush1.msra.mxu1 %v2690_v6  ;;  %935 = vmatprep.mubr.f32.mxu1 %v2609_v1 }
 0x71a   :  { %889 = vmatprep.subr.mxu1 %v2695_v7 }
 0x71b   :  { %890 = vmatpush1.msra.mxu1 %v2702_v8 }
 0x71c   :  { %891 = vmatprep.subr.mxu1 %v2712_v10 }
 0x71d   :  { %892 = vmatpush1.msra.mxu1 %v2718_v11 }
 0x71e   :  { %893 = vmatprep.subr.mxu1 %v2725_v12 }
 0x71f   :  { %894 = vmatpush1.msra.mxu1 %v2733_v13 }
 0x720   :  { %895 = vmatprep.subr.mxu1 %v2743_v15 }
 0x721   :  { %896 = vmatpush1.msra.mxu1 %v2749_v16 }
 0x722   :  { %897 = vmatprep.subr.mxu1 %v2756_v17 }
 0x723   :  { %898 = vmatpush1.msra.mxu1 %v2764_v18 }
 0x724   :  { %899 = vmatprep.subr.mxu1 %v2774_v20 }
 0x725   :  { %900 = vmatpush1.msra.mxu1 %v2780_v21 }
 0x726   :  { %901 = vmatprep.subr.mxu1 %v2787_v22 }
 0x727   :  { %902 = vmatpush1.msra.mxu1 %v2795_v23 }
 0x728   :  { %1103 = vmatprep.subr.mxu1 %v2685_v5 }
 0x7d8   :  { %v721_v9 = vpop.f32.mrf.mxu1 }
 0x7d9   :  { %v722_v32 = vadd.f32 %v721_v9, %v650_v58 }
 0x7da   :  { %v723_v56 = vpop.f32.mrf.mxu1 }
 0x7db   :  { %v724_v36 = vadd.f32 %v723_v56, %v651_v62  ;;  %v726_v27 = vmul.f32 0.5, %v722_v32 }
 0x7dd   :  { %2413 = vtanh.f32 %v724_v36  ;;  %v727_v62 = vmul.f32 0.5, %v724_v36 }
 0x7de   :  { %2415 = vtanh.f32 %v726_v27 }
 0x7ea   :  { %v2414_v39 = vpop.eup %2413 }
 0x7eb   :  { %737 = vrot.lane.b32.xlu1 %v2414_v39, %s2610_s0  ;;  %v2416_v5 = vpop.eup %2415 }
 0x7ec   :  { %v730_v53 = vmul.f32 0.5, %v2416_v5 }
 0x7ee   :  { %v732_v25 = vadd.f32 0.5, %v730_v53 }
 0x7f0   :  { %v735_v58 = vmul.f32 %v732_v25, %v637_v60 }
 0x85d   :  { %v738_v41 = vpop.permute.xlu1 %737 }
 0x85e   :  { %v740_v3 = vmul.f32 %v738_v41, %v732_v25 }
 0x860   :  { %742 = vrot.lane.b32.xlu0 %v740_v3, %s2610_s0 }
 0x8d2   :  { %v743_v30 = vpop.permute.xlu0 %742 }
 0x8d3   :  { %v745_v35 = vadd.f32 %v743_v30, %v735_v58 }
 0x8d5   :  { %2417 = vtanh.f32 %v745_v35 }
 0x8d6   :  { %2419 = vtanh.f32 %v727_v62 }
 0x8e2   :  { %v2418_v19 = vpop.eup %2417 }
 0x8e3   :  { %748 = vrot.lane.b32.xlu1 %v2418_v19, %s2610_s0  ;;  %v2420_v31 = vpop.eup %2419 }
 0x8e4   :  { %v731_v38 = vmul.f32 0.5, %v2420_v31 }
 0x8e6   :  { %v733_v50 = vadd.f32 0.5, %v731_v38 }
 0x955   :  { %v749_v0 = vpop.permute.xlu1 %748 }
 0x956   :  { %v751_v44 = vmul.f32 %v749_v0, %v733_v50 }
 0x958   :  { %752 = vst.msk [vmem:[#allocation3 + $0x18] sm:$0xff] %vm426_vm12, %v751_v44  ;;  %2331 = vmatmul.mubr.msk.f32.vlgmr.msra.gmra.mxu0 %vm325_vm14, %v751_v44 }
 0x959   :  { %753 = vst.msk [vmem:[#allocation3 + $0x20] sm:$0xff] %vm428_vm13, %v751_v44  ;;  %996 = vmatpush1.msra.mxu0 %v2690_v6  ;;  %1043 = vmatprep.mubr.f32.mxu0 %v2609_v1 }
 0x95a   :  { %997 = vmatprep.subr.mxu0 %v2695_v7 }
 0x95b   :  { %998 = vmatpush1.msra.mxu0 %v2702_v8 }
 0x95c   :  { %999 = vmatprep.subr.mxu0 %v2712_v10 }
 0x95d   :  { %1000 = vmatpush1.msra.mxu0 %v2718_v11 }
 0x95e   :  { %1001 = vmatprep.subr.mxu0 %v2725_v12 }
 0x95f   :  { %1002 = vmatpush1.msra.mxu0 %v2733_v13 }
 0x960   :  { %1003 = vmatprep.subr.mxu0 %v2743_v15 }
 0x961   :  { %1004 = vmatpush1.msra.mxu0 %v2749_v16 }
 0x962   :  { %1005 = vmatprep.subr.mxu0 %v2756_v17 }
 0x963   :  { %1006 = vmatpush1.msra.mxu0 %v2764_v18 }
 0x964   :  { %1007 = vmatprep.subr.mxu0 %v2774_v20 }
 0x965   :  { %1008 = vmatpush1.msra.mxu0 %v2780_v21 }
 0x966   :  { %1009 = vmatprep.subr.mxu0 %v2787_v22 }
 0x967   :  { %1010 = vmatpush1.msra.mxu0 %v2795_v23 }
 0xa18   :  { %v829_v60 = vpop.f32.mrf.mxu0 }
 0xa19   :  { %v830_v9 = vadd.f32 %v829_v60, %v758_v59 }
 0xa1a   :  { %v831_v32 = vpop.f32.mrf.mxu0 }
 0xa1b   :  { %v832_v56 = vadd.f32 %v831_v32, %v759_v63  ;;  %v834_v39 = vmul.f32 0.5, %v830_v9 }
 0xa1d   :  { %2421 = vtanh.f32 %v832_v56  ;;  %v835_v51 = vmul.f32 0.5, %v832_v56 }
 0xa1e   :  { %2423 = vtanh.f32 %v834_v39 }
 0xa2a   :  { %v2422_v36 = vpop.eup %2421 }
 0xa2b   :  { %845 = vrot.lane.b32.xlu0 %v2422_v36, %s2610_s0  ;;  %v2424_v27 = vpop.eup %2423 }
 0xa2c   :  { %v838_v5 = vmul.f32 0.5, %v2424_v27 }
 0xa2e   :  { %v840_v53 = vadd.f32 0.5, %v838_v5 }
 0xa30   :  { %v843_v49 = vmul.f32 %v840_v53, %v745_v35 }
 0xa9d   :  { %v846_v25 = vpop.permute.xlu0 %845 }
 0xa9e   :  { %v848_v41 = vmul.f32 %v846_v25, %v840_v53  ;;  %v3658_v25 = vsel %vm2881_vm10, %v2941_v33, %v2856_v34 }
 0xaa0   :  { %850 = vrot.lane.b32.xlu1 %v848_v41, %s2610_s0 }
 0xb12   :  { %v851_v54 = vpop.permute.xlu1 %850 }
 0xb13   :  { %v853_v59 = vadd.f32 %v851_v54, %v843_v49  ;;  %v3659_v54 = vsel %vm2887_vm11, %v2957_v48, %v2951_v46  ;;  %v1209_v46 = vld [vmem:[%s3646_s4 + $0x78] sm:$0xff]  ;;  %v1208_v48 = vld [vmem:[%s3646_s4 + $0x70] sm:$0xff] }
 0xb14   :  { %1262 = vmatprep.subr.mxu0 %v1209_v46 }
 0xb15   :  { %2425 = vtanh.f32 %v853_v59 }
 0xb16   :  { %2427 = vtanh.f32 %v835_v51 }
 0xb22   :  { %v2426_v3 = vpop.eup %2425 }
 0xb23   :  { %856 = vrot.lane.b32.xlu0 %v2426_v3, %s2610_s0  ;;  %v2428_v57 = vpop.eup %2427 }
 0xb24   :  { %v839_v63 = vmul.f32 0.5, %v2428_v57 }
 0xb26   :  { %v841_v58 = vadd.f32 0.5, %v839_v63 }
 0xb95   :  { %v857_v30 = vpop.permute.xlu0 %856 }
 0xb96   :  { %v859_v19 = vmul.f32 %v857_v30, %v841_v58  ;;  %v1207_v30 = vld [vmem:[%s3646_s4 + $0x68] sm:$0xff] }
 0xb98   :  { %860 = vst.msk [vmem:[#allocation3 + $0x20] sm:$0xff] %vm426_vm12, %v859_v19  ;;  %2332 = vmatmul.mubr.msk.f32.vlgmr.msra.gmra.mxu1 %vm325_vm14, %v859_v19 }
 0xb99   :  { %861 = vst.msk [vmem:[#allocation3 + $0x18] sm:$0xff] %vm428_vm13, %v859_v19  ;;  %1104 = vmatpush1.msra.mxu1 %v2690_v6  ;;  %1151 = vmatprep.mubr.f32.mxu1 %v2609_v1  ;;  %v1206_v19 = vld [vmem:[%s3646_s4 + $0x60] sm:$0xff] }
 0xb9a   :  { %1105 = vmatprep.subr.mxu1 %v2695_v7 }
 0xb9b   :  { %1106 = vmatpush1.msra.mxu1 %v2702_v8 }
 0xb9c   :  { %1107 = vmatprep.subr.mxu1 %v2712_v10 }
 0xb9d   :  { %1108 = vmatpush1.msra.mxu1 %v2718_v11 }
 0xb9e   :  { %1109 = vmatprep.subr.mxu1 %v2725_v12 }
 0xb9f   :  { %1110 = vmatpush1.msra.mxu1 %v2733_v13 }
 0xba0   :  { %1111 = vmatprep.subr.mxu1 %v2743_v15 }
 0xba1   :  { %1112 = vmatpush1.msra.mxu1 %v2749_v16 }
 0xba2   :  { %1113 = vmatprep.subr.mxu1 %v2756_v17 }
 0xba3   :  { %1114 = vmatpush1.msra.mxu1 %v2764_v18 }
 0xba4   :  { %1115 = vmatprep.subr.mxu1 %v2774_v20 }
 0xba5   :  { %1116 = vmatpush1.msra.mxu1 %v2780_v21 }
 0xba6   :  { %1117 = vmatprep.subr.mxu1 %v2787_v22 }
 0xba7   :  { %1118 = vmatpush1.msra.mxu1 %v2795_v23 }
 0xc58   :  { %v937_v6 = vpop.f32.mrf.mxu1 }
 0xc59   :  { %v938_v7 = vadd.f32 %v937_v6, %v866_v4  ;;  %v1205_v6 = vld [vmem:[%s3646_s4 + $0x58] sm:$0xff] }
 0xc5a   :  { %v939_v8 = vpop.f32.mrf.mxu1 }
 0xc5b   :  { %v940_v10 = vadd.f32 %v939_v8, %v867_v24  ;;  %v942_v12 = vmul.f32 0.5, %v938_v7  ;;  %v1204_v7 = vld [vmem:[%s3646_s4 + $0x50] sm:$0xff] }
 0xc5d   :  { %2429 = vtanh.f32 %v940_v10  ;;  %v943_v45 = vmul.f32 0.5, %v940_v10 }
 0xc5e   :  { %2431 = vtanh.f32 %v942_v12  ;;  %v1203_v12 = vld [vmem:[%s3646_s4 + $0x48] sm:$0xff] }
 0xc6a   :  { %v2430_v11 = vpop.eup %2429 }
 0xc6b   :  { %953 = vrot.lane.b32.xlu1 %v2430_v11, %s2610_s0  ;;  %v2432_v13 = vpop.eup %2431 }
 0xc6c   :  { %v946_v15 = vmul.f32 0.5, %v2432_v13  ;;  %v1202_v13 = vld [vmem:[%s3646_s4 + $0x40] sm:$0xff] }
 0xc6e   :  { %v948_v16 = vadd.f32 0.5, %v946_v15  ;;  %v1201_v15 = vld [vmem:[%s3646_s4 + $0x38] sm:$0xff] }
 0xc70   :  { %v951_v20 = vmul.f32 %v948_v16, %v853_v59 }
 0xcdd   :  { %v954_v17 = vpop.permute.xlu1 %953 }
 0xcde   :  { %v956_v18 = vmul.f32 %v954_v17, %v948_v16  ;;  %v1200_v16 = vld [vmem:[%s3646_s4 + $0x30] sm:$0xff]  ;;  %v1199_v17 = vld [vmem:[%s3646_s4 + $0x28] sm:$0xff] }
 0xce0   :  { %958 = vrot.lane.b32.xlu0 %v956_v18, %s2610_s0  ;;  %v1198_v18 = vld [vmem:[%s3646_s4 + $0x20] sm:$0xff] }
 0xd52   :  { %v959_v21 = vpop.permute.xlu0 %958 }
 0xd53   :  { %v961_v22 = vadd.f32 %v959_v21, %v951_v20  ;;  %v1197_v20 = vld [vmem:[%s3646_s4 + $0x18] sm:$0xff]  ;;  %v1196_v21 = vld [vmem:[%s3646_s4 + $0x10] sm:$0xff] }
 0xd55   :  { %2433 = vtanh.f32 %v961_v22 }
 0xd56   :  { %2435 = vtanh.f32 %v943_v45 }
 0xd62   :  { %v2434_v23 = vpop.eup %2433 }
 0xd63   :  { %964 = vrot.lane.b32.xlu1 %v2434_v23, %s2610_s0  ;;  %v2436_v47 = vpop.eup %2435  ;;  %v1194_v23 = vld [vmem:[%s3646_s4] sm:$0xff] }
 0xd64   :  { %v947_v61 = vmul.f32 0.5, %v2436_v47  ;;  %v3222_v47 = vld [vmem:[#allocation9 + $0x78] sm:$0xff] }
 0xd65   :  { %1413 = vmatprep.subr.mxu1 %v3222_v47 }
 0xd66   :  { %v949_v2 = vadd.f32 0.5, %v947_v61  ;;  %v3224_v61 = vld [vmem:[#allocation9 + $0x70] sm:$0xff] }
 0xdd5   :  { %v965_v4 = vpop.permute.xlu1 %964 }
 0xdd6   :  { %v967_v24 = vmul.f32 %v965_v4, %v949_v2  ;;  %v3227_v2 = vld [vmem:[#allocation9 + $0x68] sm:$0xff]  ;;  %v3232_v4 = vld [vmem:[#allocation9 + $0x60] sm:$0xff] }
 0xdd8   :  { %968 = vst.msk [vmem:[#allocation3 + $0x28] sm:$0xff] %vm426_vm12, %v967_v24  ;;  %2333 = vmatmul.mubr.msk.f32.vlgmr.msra.gmra.mxu0 %vm325_vm14, %v967_v24 }
 0xdd9   :  { %969 = vst.msk [vmem:[#allocation3 + $0x10] sm:$0xff] %vm428_vm13, %v967_v24  ;;  %1310 = vmatprep.mubr.f32.mxu0 %v2609_v1  ;;  %1263 = vmatpush1.msra.mxu0 %v1208_v48  ;;  %v3235_v24 = vld [vmem:[#allocation9 + $0x58] sm:$0xff] }
 0xdda   :  { %1264 = vmatprep.subr.mxu0 %v1207_v30 }
 0xddb   :  { %1265 = vmatpush1.msra.mxu0 %v1206_v19 }
 0xddc   :  { %1266 = vmatprep.subr.mxu0 %v1205_v6 }
 0xddd   :  { %1267 = vmatpush1.msra.mxu0 %v1204_v7 }
 0xdde   :  { %1268 = vmatprep.subr.mxu0 %v1203_v12 }
 0xddf   :  { %1269 = vmatpush1.msra.mxu0 %v1202_v13 }
 0xde0   :  { %1270 = vmatprep.subr.mxu0 %v1201_v15 }
 0xde1   :  { %1271 = vmatpush1.msra.mxu0 %v1200_v16 }
 0xde2   :  { %1272 = vmatprep.subr.mxu0 %v1199_v17 }
 0xde3   :  { %1273 = vmatpush1.msra.mxu0 %v1198_v18 }
 0xde4   :  { %1274 = vmatprep.subr.mxu0 %v1197_v20 }
 0xde5   :  { %1275 = vmatpush1.msra.mxu0 %v1196_v21 }
 0xe98   :  { %v1045_v35 = vpop.f32.mrf.mxu0 }
 0xe99   :  { %v1046_v62 = vadd.f32 %v1045_v35, %v974_v28  ;;  %v3237_v35 = vld [vmem:[#allocation9 + $0x50] sm:$0xff] }
 0xe9a   :  { %v1047_v31 = vpop.f32.mrf.mxu0 }
 0xe9b   :  { %v1048_v38 = vadd.f32 %v1047_v31, %v975_v43  ;;  %v1050_v0 = vmul.f32 0.5, %v1046_v62  ;;  %v3240_v62 = vld [vmem:[#allocation9 + $0x48] sm:$0xff]  ;;  %v3244_v31 = vld [vmem:[#allocation9 + $0x40] sm:$0xff] }
 0xe9d   :  { %2437 = vtanh.f32 %v1048_v38  ;;  %v1051_v42 = vmul.f32 0.5, %v1048_v38  ;;  %v3247_v38 = vld [vmem:[#allocation9 + $0x38] sm:$0xff] }
 0xe9e   :  { %2439 = vtanh.f32 %v1050_v0  ;;  %v3252_v0 = vld [vmem:[#allocation9 + $0x28] sm:$0xff] }
 0xeaa   :  { %v2438_v50 = vpop.eup %2437 }
 0xeab   :  { %1061 = vrot.lane.b32.xlu0 %v2438_v50, %s2610_s0  ;;  %v2440_v44 = vpop.eup %2439  ;;  %v3249_v50 = vld [vmem:[#allocation9 + $0x30] sm:$0xff] }
 0xeac   :  { %v1054_v60 = vmul.f32 0.5, %v2440_v44  ;;  %v3256_v44 = vld [vmem:[#allocation9 + $0x20] sm:$0xff] }
 0xeae   :  { %v1056_v9 = vadd.f32 0.5, %v1054_v60  ;;  %v3259_v60 = vld [vmem:[#allocation9 + $0x18] sm:$0xff] }
 0xeb0   :  { %v1059_v40 = vmul.f32 %v1056_v9, %v961_v22  ;;  %v1195_v22 = vld [vmem:[%s3646_s4 + $0x8] sm:$0xff] }
 0xeb1   :  { %1276 = vmatprep.subr.mxu0 %v1195_v22 }
 0xeb2   :  { %1277 = vmatpush1.msra.mxu0 %v1194_v23 }
 0xeb3   :  { %1625 = vmatprep.subr.mxu0 %v3222_v47 }
 0xf1d   :  { %v1062_v32 = vpop.permute.xlu0 %1061 }
 0xf1e   :  { %v1064_v56 = vmul.f32 %v1062_v32, %v1056_v9  ;;  %v3261_v9 = vld [vmem:[#allocation9 + $0x10] sm:$0xff]  ;;  %v3264_v32 = vld [vmem:[#allocation9 + $0x8] sm:$0xff] }
 0xf20   :  { %1066 = vrot.lane.b32.xlu1 %v1064_v56, %s2610_s0  ;;  %v3268_v56 = vld [vmem:[#allocation9] sm:$0xff] }
 0xf92   :  { %v1067_v14 = vpop.permute.xlu1 %1066 }
 0xf93   :  { %v1069_v28 = vadd.f32 %v1067_v14, %v1059_v40 }
 0xf95   :  { %2441 = vtanh.f32 %v1069_v28 }
 0xf96   :  { %2443 = vtanh.f32 %v1051_v42 }
 0xfa2   :  { %v2442_v36 = vpop.eup %2441 }
 0xfa3   :  { %1072 = vrot.lane.b32.xlu0 %v2442_v36, %s2610_s0  ;;  %v2444_v26 = vpop.eup %2443 }
 0xfa4   :  { %v1055_v43 = vmul.f32 0.5, %v2444_v26 }
 0xfa6   :  { %v1057_v39 = vadd.f32 0.5, %v1055_v43 }
0x1015   :  { %v1073_v27 = vpop.permute.xlu0 %1072 }
0x1016   :  { %v1075_v5 = vmul.f32 %v1073_v27, %v1057_v39  ;;  %v1188_v27 = vld [vmem:[#allocation3 + $0x10] sm:$0xff] }
0x1018   :  { %1076 = vst.msk [vmem:[#allocation3 + $0x30] sm:$0xff] %vm426_vm12, %v1075_v5  ;;  %2334 = vmatmul.mubr.msk.f32.vlgmr.msra.gmra.mxu1 %vm325_vm14, %v1075_v5 }
0x1019   :  { %1077 = vst.msk [vmem:[#allocation3 + $0x8] sm:$0xff] %vm428_vm13, %v1075_v5  ;;  %1461 = vmatprep.mubr.f32.mxu1 %v2609_v1  ;;  %1414 = vmatpush1.msra.mxu1 %v3224_v61  ;;  %v1189_v5 = vld [vmem:[#allocation3 + $0x18] sm:$0xff] }
0x101a   :  { %1415 = vmatprep.subr.mxu1 %v3227_v2 }
0x101b   :  { %1416 = vmatpush1.msra.mxu1 %v3232_v4 }
0x101c   :  { %1417 = vmatprep.subr.mxu1 %v3235_v24 }
0x101d   :  { %1418 = vmatpush1.msra.mxu1 %v3237_v35 }
0x101e   :  { %1419 = vmatprep.subr.mxu1 %v3240_v62 }
0x101f   :  { %1420 = vmatpush1.msra.mxu1 %v3244_v31 }
0x1020   :  { %1421 = vmatprep.subr.mxu1 %v3247_v38  ;;  %v1187_v39 = vld [vmem:[#allocation3 + $0x8] sm:$0xff] }
0x1021   :  { %1422 = vmatpush1.msra.mxu1 %v3249_v50 }
0x1022   :  { %1423 = vmatprep.subr.mxu1 %v3252_v0 }
0x1023   :  { %1424 = vmatpush1.msra.mxu1 %v3256_v44 }
0x1024   :  { %1425 = vmatprep.subr.mxu1 %v3259_v60 }
0x1025   :  { %1426 = vmatpush1.msra.mxu1 %v3261_v9 }
0x1026   :  { %1427 = vmatprep.subr.mxu1 %v3264_v32 }
0x1027   :  { %1428 = vmatpush1.msra.mxu1 %v3268_v56 }
0x1028   :  { %1462 = vmatmul.mubr.f32.vlgmr.msra.gmra.mxu1 %v2609_v1  ;;  %1519 = vmatprep.subr.mxu1 %v3222_v47 }
0x1029   :  { %1520 = vmatpush1.msra.mxu1 %v3224_v61  ;;  %1567 = vmatprep.mubr.f32.mxu1 %v2609_v1 }
0x102a   :  { %1521 = vmatprep.subr.mxu1 %v3227_v2 }
0x102b   :  { %1522 = vmatpush1.msra.mxu1 %v3232_v4 }
0x102c   :  { %1523 = vmatprep.subr.mxu1 %v3235_v24 }
0x102d   :  { %1524 = vmatpush1.msra.mxu1 %v3237_v35 }
0x102e   :  { %1525 = vmatprep.subr.mxu1 %v3240_v62 }
0x102f   :  { %1526 = vmatpush1.msra.mxu1 %v3244_v31 }
0x1030   :  { %1527 = vmatprep.subr.mxu1 %v3247_v38 }
0x1031   :  { %1528 = vmatpush1.msra.mxu1 %v3249_v50 }
0x1032   :  { %1529 = vmatprep.subr.mxu1 %v3252_v0 }
0x1033   :  { %1530 = vmatpush1.msra.mxu1 %v3256_v44 }
0x1034   :  { %1531 = vmatprep.subr.mxu1 %v3259_v60 }
0x1035   :  { %1532 = vmatpush1.msra.mxu1 %v3261_v9 }
0x1036   :  { %1533 = vmatprep.subr.mxu1 %v3264_v32 }
0x1037   :  { %1534 = vmatpush1.msra.mxu1 %v3268_v56 }
0x1038   :  { %1731 = vmatprep.subr.mxu1 %v3222_v47 }
0x10d8   :  { %v1153_v53 = vpop.f32.mrf.mxu1 }
0x10d9   :  { %v1154_v41 = vadd.f32 %v1153_v53, %v3658_v25  ;;  %v1190_v53 = vld [vmem:[#allocation3 + $0x20] sm:$0xff]  ;;  %v1191_v25 = vld [vmem:[#allocation3 + $0x28] sm:$0xff] }
0x10da   :  { %v1155_v49 = vpop.f32.mrf.mxu1 }
0x10db   :  { %v3168_v59 = vadd.f32 %v1155_v49, %v3659_v54  ;;  %v1158_v51 = vmul.f32 0.5, %v1154_v41  ;;  %v1192_v41 = vld [vmem:[#allocation3 + $0x30] sm:$0xff] }
0x10dc   :  { %v1210_v54 = vld [vmem:[#allocation10] sm:$0x3] }
0x10dd   :  { %2445 = vtanh.f32 %v3168_v59  ;;  %v1159_v40 = vmul.f32 0.5, %v3168_v59 }
0x10de   :  { %2447 = vtanh.f32 %v1158_v51  ;;  %v3660_v51 = vsub.s32 0, %v2851_v29 }
0x10ea   :  { %v2446_v3 = vpop.eup %2445 }
0x10eb   :  { %1169 = vrot.lane.b32.xlu1 %v2446_v3, %s2610_s0  ;;  %v2448_v57 = vpop.eup %2447 }
0x10ec   :  { %v1162_v63 = vmul.f32 0.5, %v2448_v57  ;;  %v1215_v57 = vrot.slane %v1210_v54, %v3660_v51 }
0x10ee   :  { %v1164_v58 = vadd.f32 0.5, %v1162_v63 }
0x10f0   :  { %v1167_v8 = vmul.f32 %v1164_v58, %v1069_v28 }
0x115d   :  { %v1170_v34 = vpop.permute.xlu1 %1169 }
0x115e   :  { %v1172_v33 = vmul.f32 %v1170_v34, %v1164_v58  ;;  %v3661_v58 = vsub.s32 1, %v2851_v29 }
0x1160   :  { %1174 = vrot.lane.b32.xlu0 %v1172_v33, %s2610_s0  ;;  %v1219_v34 = vrot.slane %v1210_v54, %v3661_v58  ;;  %v1463_v54 = vpop.f32.mrf.mxu1 }
0x11d2   :  { %v1175_v10 = vpop.permute.xlu0 %1174 }
0x11d3   :  { %v1177_v11 = vadd.f32 %v1175_v10, %v1167_v8 }
0x11d5   :  { %2449 = vtanh.f32 %v1177_v11 }
0x11d6   :  { %2451 = vtanh.f32 %v1159_v40 }
0x11e2   :  { %v2450_v45 = vpop.eup %2449 }
0x11e3   :  { %1180 = vrot.lane.b32.xlu1 %v2450_v45, %s2610_s0  ;;  %v2452_v14 = vpop.eup %2451 }
0x11e4   :  { %v1163_v28 = vmul.f32 0.5, %v2452_v14 }
0x11e6   :  { %v1165_v36 = vadd.f32 0.5, %v1163_v28 }
0x1255   :  { %v1181_v42 = vpop.permute.xlu1 %1180 }
0x1256   :  { %v1183_v26 = vmul.f32 %v1181_v42, %v1165_v36 }
0x1258   :  { %1184 = vst.msk [vmem:[#allocation3 + $0x38] sm:$0xff] %vm426_vm12, %v1183_v26 }
0x1259   :  { %1185 = vst.msk [vmem:[#allocation3] sm:$0xff] %vm428_vm13, %v1183_v26 }
0x125f   :  { %v1193_v49 = vld [vmem:[#allocation3 + $0x38] sm:$0xff] }
0x1260   :  { %v1186_v43 = vld [vmem:[#allocation3] sm:$0xff] }
0x1261   :  { %2335 = vmatmul.mubr.msk.f32.vlgmr.msra.gmra.mxu0 %vm325_vm14, %v1186_v43 }
0x1262   :  { %1316 = vmatprep.mubr.f32.mxu0 %v2609_v1  ;;  %1626 = vmatpush1.msra.mxu0 %v3224_v61 }
0x1263   :  { %1627 = vmatprep.subr.mxu0 %v3227_v2 }
0x1264   :  { %1628 = vmatpush1.msra.mxu0 %v3232_v4 }
0x1265   :  { %2336 = vmatmul.mubr.msk.f32.gmra.mxu0 %vm325_vm14, %v1187_v39  ;;  %1629 = vmatprep.subr.mxu0 %v3235_v24 }
0x1266   :  { %1322 = vmatprep.mubr.f32.mxu0 %v2609_v1  ;;  %1630 = vmatpush1.msra.mxu0 %v3237_v35 }
0x1267   :  { %1631 = vmatprep.subr.mxu0 %v3240_v62 }
0x1268   :  { %1632 = vmatpush1.msra.mxu0 %v3244_v31 }
0x1269   :  { %2337 = vmatmul.mubr.msk.f32.gmra.mxu0 %vm325_vm14, %v1188_v27  ;;  %1633 = vmatprep.subr.mxu0 %v3247_v38 }
0x126a   :  { %1328 = vmatprep.mubr.f32.mxu0 %v2609_v1  ;;  %1634 = vmatpush1.msra.mxu0 %v3249_v50 }
0x126b   :  { %1635 = vmatprep.subr.mxu0 %v3252_v0 }
0x126c   :  { %1636 = vmatpush1.msra.mxu0 %v3256_v44 }
0x126d   :  { %2338 = vmatmul.mubr.msk.f32.gmra.mxu0 %vm325_vm14, %v1189_v5  ;;  %1637 = vmatprep.subr.mxu0 %v3259_v60 }
0x126e   :  { %1334 = vmatprep.mubr.f32.mxu0 %v2609_v1  ;;  %1638 = vmatpush1.msra.mxu0 %v3261_v9 }
0x126f   :  { %1639 = vmatprep.subr.mxu0 %v3264_v32 }
0x1270   :  { %1640 = vmatpush1.msra.mxu0 %v3268_v56 }
0x1271   :  { %2339 = vmatmul.mubr.msk.f32.gmra.mxu0 %vm325_vm14, %v1190_v53  ;;  %1833 = vmatprep.subr.mxu0 %v3222_v47 }
0x1272   :  { %1340 = vmatprep.mubr.f32.mxu0 %v2609_v1 }
0x1275   :  { %2340 = vmatmul.mubr.msk.f32.gmra.mxu0 %vm325_vm14, %v1191_v25 }
0x1276   :  { %1346 = vmatprep.mubr.f32.mxu0 %v2609_v1 }
0x1279   :  { %2341 = vmatmul.mubr.msk.f32.gmra.mxu0 %vm325_vm14, %v1192_v41 }
0x127a   :  { %1352 = vmatprep.mubr.f32.mxu0 %v2609_v1 }
0x127d   :  { %2342 = vmatmul.mubr.msk.f32.gmra.mxu0 %vm325_vm14, %v1193_v49 }
0x127e   :  { %1673 = vmatprep.mubr.f32.mxu0 %v2609_v1 }
0x1321   :  { %v1312_v59 = vpop.f32.mrf.mxu0 }
0x1322   :  { %v3393_v41 = vadd.f32 %v1312_v59, %v1215_v57 }
0x1323   :  { %v1314_v3 = vpop.f32.mrf.mxu0 }
0x1325   :  { %v1318_v63 = vpop.f32.mrf.mxu0 }
0x1326   :  { %v3329_v33 = vadd.f32 %v1318_v63, %v1215_v57 }
0x1327   :  { %v1320_v46 = vpop.f32.mrf.mxu0 }
0x1328   :  { %v3331_v48 = vadd.f32 %v1320_v46, %v1219_v34  ;;  %v3405_v46 = vadd.f32 %v1314_v3, %v1219_v34 }
0x1329   :  { %v1324_v30 = vpop.f32.mrf.mxu0 }
0x132a   :  { %v3333_v19 = vadd.f32 %v1324_v30, %v1215_v57 }
0x132b   :  { %v1326_v6 = vpop.f32.mrf.mxu0 }
0x132c   :  { %v3335_v7 = vadd.f32 %v1326_v6, %v1219_v34 }
0x132d   :  { %v1330_v8 = vpop.f32.mrf.mxu0 }
0x132e   :  { %v3337_v10 = vadd.f32 %v1330_v8, %v1215_v57  ;;  %v1465_v8 = vpop.f32.mrf.mxu1 }
0x132f   :  { %v1332_v11 = vpop.f32.mrf.mxu0 }
0x1330   :  { %v3339_v12 = vadd.f32 %v1332_v11, %v1219_v34 }
0x1331   :  { %v1336_v13 = vpop.f32.mrf.mxu0 }
0x1332   :  { %v3341_v29 = vadd.f32 %v1336_v13, %v1215_v57 }
0x1333   :  { %v1338_v15 = vpop.f32.mrf.mxu0 }
0x1334   :  { %v3343_v16 = vadd.f32 %v1338_v15, %v1219_v34  ;;  %v1710_v17 = vsel %vm2881_vm10, %v3337_v10, %v3341_v29  ;;  %v1812_v18 = vsel %vm2881_vm10, %v3341_v29, %v3337_v10 }
0x1335   :  { %v1342_v20 = vpop.f32.mrf.mxu0 }
0x1336   :  { %v3353_v21 = vadd.f32 %v1342_v20, %v1215_v57  ;;  %v1711_v22 = vsel %vm2887_vm11, %v3339_v12, %v3343_v16  ;;  %v1813_v23 = vsel %vm2887_vm11, %v3343_v16, %v3339_v12 }
0x1337   :  { %v1344_v45 = vpop.f32.mrf.mxu0 }
0x1338   :  { %v3363_v40 = vadd.f32 %v1344_v45, %v1219_v34  ;;  %v1604_v14 = vsel %vm2881_vm10, %v3333_v19, %v3353_v21  ;;  %v1914_v28 = vsel %vm2881_vm10, %v3353_v21, %v3333_v19 }
0x1339   :  { %v1348_v36 = vpop.f32.mrf.mxu0 }
0x133a   :  { %v3373_v42 = vadd.f32 %v1348_v36, %v1215_v57  ;;  %v1605_v26 = vsel %vm2887_vm11, %v3335_v7, %v3363_v40  ;;  %v1915_v43 = vsel %vm2887_vm11, %v3363_v40, %v3335_v7 }
0x133b   :  { %v1350_v39 = vpop.f32.mrf.mxu0 }
0x133c   :  { %v3383_v27 = vadd.f32 %v1350_v39, %v1219_v34  ;;  %v1498_v5 = vsel %vm2881_vm10, %v3329_v33, %v3373_v42  ;;  %v2016_v53 = vsel %vm2881_vm10, %v3373_v42, %v3329_v33 }
0x133d   :  { %v1354_v25 = vpop.f32.mrf.mxu0 }
0x133e   :  { %v3395_v49 = vadd.f32 %v1354_v25, %v1215_v57  ;;  %v1499_v51 = vsel %vm2887_vm11, %v3331_v48, %v3383_v27 }
0x133f   :  { %v1356_v58 = vpop.f32.mrf.mxu0 }
0x1340   :  { %v1395_v59 = vsel %vm2881_vm10, %v3393_v41, %v3395_v49  ;;  %v3411_v57 = vadd.f32 %v1356_v58, %v1219_v34 }
0x1341   :  { %v1464_v13 = vadd.f32 %v1463_v54, %v1395_v59 }
0x1342   :  { %v1396_v6 = vsel %vm2887_vm11, %v3405_v46, %v3411_v57 }
0x1343   :  { %v1466_v11 = vadd.f32 %v1465_v8, %v1396_v6  ;;  %v1468_v15 = vmul.f32 0.5, %v1464_v13 }
0x1345   :  { %2453 = vtanh.f32 %v1466_v11  ;;  %v1469_v6 = vmul.f32 0.5, %v1466_v11 }
0x1346   :  { %2455 = vtanh.f32 %v1468_v15 }
0x1352   :  { %v2454_v34 = vpop.eup %2453 }
0x1353   :  { %1479 = vrot.lane.b32.xlu0 %v2454_v34, %s2610_s0  ;;  %v2456_v20 = vpop.eup %2455 }
0x1354   :  { %v1472_v45 = vmul.f32 0.5, %v2456_v20 }
0x1356   :  { %v1474_v36 = vadd.f32 0.5, %v1472_v45 }
0x1358   :  { %v1477_v58 = vmul.f32 0.0, %v1474_v36 }
0x13c5   :  { %v1480_v39 = vpop.permute.xlu0 %1479 }
0x13c6   :  { %v1482_v25 = vmul.f32 %v1480_v39, %v1474_v36 }
0x13c8   :  { %1484 = vrot.lane.b32.xlu1 %v1482_v25, %s2610_s0 }
0x143a   :  { %v1485_v30 = vpop.permute.xlu1 %1484 }
0x143b   :  { %v1487_v63 = vadd.f32 %v1485_v30, %v1477_v58 }
0x143d   :  { %2457 = vtanh.f32 %v1487_v63 }
0x143e   :  { %2459 = vtanh.f32 %v1469_v6 }
0x144a   :  { %v2458_v3 = vpop.eup %2457 }
0x144b   :  { %1490 = vrot.lane.b32.xlu0 %v2458_v3, %s2610_s0  ;;  %v2460_v8 = vpop.eup %2459 }
0x144c   :  { %v1473_v54 = vmul.f32 0.5, %v2460_v8 }
0x144e   :  { %v1475_v59 = vadd.f32 0.5, %v1473_v54 }
0x14bd   :  { %v1491_v34 = vpop.permute.xlu0 %1490 }
0x14be   :  { %v3428_v13 = vmul.f32 %v1491_v34, %v1475_v59 }
0x14c0   :  { %2343 = vmatmul.mubr.msk.f32.vlgmr.msra.gmra.mxu1 %vm325_vm14, %v3428_v13 }
0x14c1   :  { %1732 = vmatpush1.msra.mxu1 %v3224_v61  ;;  %1779 = vmatprep.mubr.f32.mxu1 %v2609_v1 }
0x14c2   :  { %1733 = vmatprep.subr.mxu1 %v3227_v2 }
0x14c3   :  { %1734 = vmatpush1.msra.mxu1 %v3232_v4 }
0x14c4   :  { %1735 = vmatprep.subr.mxu1 %v3235_v24 }
0x14c5   :  { %1736 = vmatpush1.msra.mxu1 %v3237_v35 }
0x14c6   :  { %1737 = vmatprep.subr.mxu1 %v3240_v62 }
0x14c7   :  { %1738 = vmatpush1.msra.mxu1 %v3244_v31 }
0x14c8   :  { %1739 = vmatprep.subr.mxu1 %v3247_v38 }
0x14c9   :  { %1740 = vmatpush1.msra.mxu1 %v3249_v50 }
0x14ca   :  { %1741 = vmatprep.subr.mxu1 %v3252_v0 }
0x14cb   :  { %1742 = vmatpush1.msra.mxu1 %v3256_v44 }
0x14cc   :  { %1743 = vmatprep.subr.mxu1 %v3259_v60 }
0x14cd   :  { %1744 = vmatpush1.msra.mxu1 %v3261_v9 }
0x14ce   :  { %1745 = vmatprep.subr.mxu1 %v3264_v32 }
0x14cf   :  { %1746 = vmatpush1.msra.mxu1 %v3268_v56 }
0x14d0   :  { %1935 = vmatprep.subr.mxu1 %v3222_v47 }
0x1580   :  { %v1569_v30 = vpop.f32.mrf.mxu1 }
0x1581   :  { %v1570_v3 = vadd.f32 %v1569_v30, %v1498_v5 }
0x1582   :  { %v1571_v11 = vpop.f32.mrf.mxu1 }
0x1583   :  { %v1572_v15 = vadd.f32 %v1571_v11, %v1499_v51  ;;  %v1574_v45 = vmul.f32 0.5, %v1570_v3 }
0x1585   :  { %2461 = vtanh.f32 %v1572_v15  ;;  %v1575_v51 = vmul.f32 0.5, %v1572_v15 }
0x1586   :  { %2463 = vtanh.f32 %v1574_v45 }
0x1592   :  { %v2462_v20 = vpop.eup %2461 }
0x1593   :  { %1585 = vrot.lane.b32.xlu1 %v2462_v20, %s2610_s0  ;;  %v2464_v36 = vpop.eup %2463 }
0x1594   :  { %v1578_v39 = vmul.f32 0.5, %v2464_v36 }
0x1596   :  { %v1580_v25 = vadd.f32 0.5, %v1578_v39 }
0x1598   :  { %v1583_v8 = vmul.f32 %v1580_v25, %v1487_v63 }
0x1605   :  { %v1586_v58 = vpop.permute.xlu1 %1585 }
0x1606   :  { %v1588_v6 = vmul.f32 %v1586_v58, %v1580_v25 }
0x1608   :  { %1590 = vrot.lane.b32.xlu0 %v1588_v6, %s2610_s0 }
0x167a   :  { %v1591_v54 = vpop.permute.xlu0 %1590 }
0x167b   :  { %v1593_v59 = vadd.f32 %v1591_v54, %v1583_v8 }
0x167d   :  { %2465 = vtanh.f32 %v1593_v59 }
0x167e   :  { %2467 = vtanh.f32 %v1575_v51 }
0x168a   :  { %v2466_v5 = vpop.eup %2465 }
0x168b   :  { %1596 = vrot.lane.b32.xlu1 %v2466_v5, %s2610_s0  ;;  %v2468_v34 = vpop.eup %2467 }
0x168c   :  { %v1579_v30 = vmul.f32 0.5, %v2468_v34 }
0x168e   :  { %v1581_v3 = vadd.f32 0.5, %v1579_v30 }
0x16fd   :  { %v1597_v11 = vpop.permute.xlu1 %1596 }
0x16fe   :  { %v1599_v20 = vmul.f32 %v1597_v11, %v1581_v3 }
0x1700   :  { %2344 = vmatmul.mubr.msk.f32.vlgmr.msra.gmra.mxu0 %vm325_vm14, %v1599_v20 }
0x1701   :  { %1834 = vmatpush1.msra.mxu0 %v3224_v61  ;;  %1881 = vmatprep.mubr.f32.mxu0 %v2609_v1 }
0x1702   :  { %1835 = vmatprep.subr.mxu0 %v3227_v2 }
0x1703   :  { %1836 = vmatpush1.msra.mxu0 %v3232_v4 }
0x1704   :  { %1837 = vmatprep.subr.mxu0 %v3235_v24 }
0x1705   :  { %1838 = vmatpush1.msra.mxu0 %v3237_v35 }
0x1706   :  { %1839 = vmatprep.subr.mxu0 %v3240_v62 }
0x1707   :  { %1840 = vmatpush1.msra.mxu0 %v3244_v31 }
0x1708   :  { %1841 = vmatprep.subr.mxu0 %v3247_v38 }
0x1709   :  { %1842 = vmatpush1.msra.mxu0 %v3249_v50 }
0x170a   :  { %1843 = vmatprep.subr.mxu0 %v3252_v0 }
0x170b   :  { %1844 = vmatpush1.msra.mxu0 %v3256_v44 }
0x170c   :  { %1845 = vmatprep.subr.mxu0 %v3259_v60 }
0x170d   :  { %1846 = vmatpush1.msra.mxu0 %v3261_v9 }
0x170e   :  { %1847 = vmatprep.subr.mxu0 %v3264_v32 }
0x170f   :  { %1848 = vmatpush1.msra.mxu0 %v3268_v56 }
0x1710   :  { %2037 = vmatprep.subr.mxu0 %v3222_v47 }
0x17c0   :  { %v1675_v63 = vpop.f32.mrf.mxu0 }
0x17c1   :  { %v1676_v15 = vadd.f32 %v1675_v63, %v1604_v14 }
0x17c2   :  { %v1677_v45 = vpop.f32.mrf.mxu0 }
0x17c3   :  { %v1678_v36 = vadd.f32 %v1677_v45, %v1605_v26  ;;  %v1680_v25 = vmul.f32 0.5, %v1676_v15 }
0x17c5   :  { %2469 = vtanh.f32 %v1678_v36  ;;  %v1681_v26 = vmul.f32 0.5, %v1678_v36 }
0x17c6   :  { %2471 = vtanh.f32 %v1680_v25 }
0x17d2   :  { %v2470_v39 = vpop.eup %2469 }
0x17d3   :  { %1691 = vrot.lane.b32.xlu0 %v2470_v39, %s2610_s0  ;;  %v2472_v58 = vpop.eup %2471 }
0x17d4   :  { %v1684_v6 = vmul.f32 0.5, %v2472_v58 }
0x17d6   :  { %v1686_v8 = vadd.f32 0.5, %v1684_v6 }
0x17d8   :  { %v1689_v14 = vmul.f32 %v1686_v8, %v1593_v59 }
0x1845   :  { %v1692_v54 = vpop.permute.xlu0 %1691 }
0x1846   :  { %v1694_v5 = vmul.f32 %v1692_v54, %v1686_v8 }
0x1848   :  { %1696 = vrot.lane.b32.xlu1 %v1694_v5, %s2610_s0 }
0x18ba   :  { %v1697_v51 = vpop.permute.xlu1 %1696 }
0x18bb   :  { %v1699_v34 = vadd.f32 %v1697_v51, %v1689_v14 }
0x18bd   :  { %2473 = vtanh.f32 %v1699_v34 }
0x18be   :  { %2475 = vtanh.f32 %v1681_v26 }
0x18ca   :  { %v2474_v30 = vpop.eup %2473 }
0x18cb   :  { %1702 = vrot.lane.b32.xlu0 %v2474_v30, %s2610_s0  ;;  %v2476_v3 = vpop.eup %2475 }
0x18cc   :  { %v1685_v11 = vmul.f32 0.5, %v2476_v3 }
0x18ce   :  { %v1687_v20 = vadd.f32 0.5, %v1685_v11 }
0x193d   :  { %v1703_v63 = vpop.permute.xlu0 %1702 }
0x193e   :  { %v1705_v15 = vmul.f32 %v1703_v63, %v1687_v20 }
0x1940   :  { %2345 = vmatmul.mubr.msk.f32.vlgmr.msra.gmra.mxu1 %vm325_vm14, %v1705_v15 }
0x1941   :  { %1936 = vmatpush1.msra.mxu1 %v3224_v61  ;;  %1983 = vmatprep.mubr.f32.mxu1 %v2609_v1 }
0x1942   :  { %1937 = vmatprep.subr.mxu1 %v3227_v2 }
0x1943   :  { %1938 = vmatpush1.msra.mxu1 %v3232_v4 }
0x1944   :  { %1939 = vmatprep.subr.mxu1 %v3235_v24 }
0x1945   :  { %1940 = vmatpush1.msra.mxu1 %v3237_v35 }
0x1946   :  { %1941 = vmatprep.subr.mxu1 %v3240_v62 }
0x1947   :  { %1942 = vmatpush1.msra.mxu1 %v3244_v31 }
0x1948   :  { %1943 = vmatprep.subr.mxu1 %v3247_v38 }
0x1949   :  { %1944 = vmatpush1.msra.mxu1 %v3249_v50 }
0x194a   :  { %1945 = vmatprep.subr.mxu1 %v3252_v0 }
0x194b   :  { %1946 = vmatpush1.msra.mxu1 %v3256_v44 }
0x194c   :  { %1947 = vmatprep.subr.mxu1 %v3259_v60 }
0x194d   :  { %1948 = vmatpush1.msra.mxu1 %v3261_v9 }
0x194e   :  { %1949 = vmatprep.subr.mxu1 %v3264_v32 }
0x194f   :  { %1950 = vmatpush1.msra.mxu1 %v3268_v56 }
0x1950   :  { %2139 = vmatprep.subr.mxu1 %v3222_v47 }
0x1a00   :  { %v1781_v59 = vpop.f32.mrf.mxu1 }
0x1a01   :  { %v1782_v45 = vadd.f32 %v1781_v59, %v1710_v17 }
0x1a02   :  { %v1783_v36 = vpop.f32.mrf.mxu1 }
0x1a03   :  { %v1784_v39 = vadd.f32 %v1783_v36, %v1711_v22  ;;  %v1786_v58 = vmul.f32 0.5, %v1782_v45 }
0x1a05   :  { %2477 = vtanh.f32 %v1784_v39  ;;  %v1787_v22 = vmul.f32 0.5, %v1784_v39 }
0x1a06   :  { %2479 = vtanh.f32 %v1786_v58 }
0x1a12   :  { %v2478_v25 = vpop.eup %2477 }
0x1a13   :  { %1797 = vrot.lane.b32.xlu1 %v2478_v25, %s2610_s0  ;;  %v2480_v47 = vpop.eup %2479 }
0x1a14   :  { %v1790_v6 = vmul.f32 0.5, %v2480_v47 }
0x1a16   :  { %v1792_v8 = vadd.f32 0.5, %v1790_v6 }
0x1a18   :  { %v1795_v17 = vmul.f32 %v1792_v8, %v1699_v34 }
0x1a85   :  { %v1798_v54 = vpop.permute.xlu1 %1797 }
0x1a86   :  { %v1800_v5 = vmul.f32 %v1798_v54, %v1792_v8 }
0x1a88   :  { %1802 = vrot.lane.b32.xlu0 %v1800_v5, %s2610_s0 }
0x1afa   :  { %v1803_v14 = vpop.permute.xlu0 %1802 }
0x1afb   :  { %v1805_v51 = vadd.f32 %v1803_v14, %v1795_v17 }
0x1afd   :  { %2481 = vtanh.f32 %v1805_v51 }
0x1afe   :  { %2483 = vtanh.f32 %v1787_v22 }
0x1b0a   :  { %v2482_v30 = vpop.eup %2481 }
0x1b0b   :  { %1808 = vrot.lane.b32.xlu1 %v2482_v30, %s2610_s0  ;;  %v2484_v26 = vpop.eup %2483 }
0x1b0c   :  { %v1791_v3 = vmul.f32 0.5, %v2484_v26  ;;  %v3662_v26 = vsel %vm2887_vm11, %v3383_v27, %v3331_v48 }
0x1b0e   :  { %v1793_v11 = vadd.f32 0.5, %v1791_v3 }
0x1b7d   :  { %v1809_v20 = vpop.permute.xlu1 %1808 }
0x1b7e   :  { %v1811_v63 = vmul.f32 %v1809_v20, %v1793_v11 }
0x1b80   :  { %2346 = vmatmul.mubr.msk.f32.vlgmr.msra.gmra.mxu0 %vm325_vm14, %v1811_v63 }
0x1b81   :  { %2038 = vmatpush1.msra.mxu0 %v3224_v61  ;;  %2085 = vmatprep.mubr.f32.mxu0 %v2609_v1 }
0x1b82   :  { %2039 = vmatprep.subr.mxu0 %v3227_v2 }
0x1b83   :  { %2040 = vmatpush1.msra.mxu0 %v3232_v4 }
0x1b84   :  { %2041 = vmatprep.subr.mxu0 %v3235_v24 }
0x1b85   :  { %2042 = vmatpush1.msra.mxu0 %v3237_v35 }
0x1b86   :  { %2043 = vmatprep.subr.mxu0 %v3240_v62 }
0x1b87   :  { %2044 = vmatpush1.msra.mxu0 %v3244_v31 }
0x1b88   :  { %2045 = vmatprep.subr.mxu0 %v3247_v38 }
0x1b89   :  { %2046 = vmatpush1.msra.mxu0 %v3249_v50 }
0x1b8a   :  { %2047 = vmatprep.subr.mxu0 %v3252_v0 }
0x1b8b   :  { %2048 = vmatpush1.msra.mxu0 %v3256_v44 }
0x1b8c   :  { %2049 = vmatprep.subr.mxu0 %v3259_v60 }
0x1b8d   :  { %2050 = vmatpush1.msra.mxu0 %v3261_v9 }
0x1b8e   :  { %2051 = vmatprep.subr.mxu0 %v3264_v32 }
0x1b8f   :  { %2052 = vmatpush1.msra.mxu0 %v3268_v56 }
0x1b90   :  { %2361 = vmatprep.subr.mxu0 %v2609_v1 }
0x1c40   :  { %v1883_v34 = vpop.f32.mrf.mxu0 }
0x1c41   :  { %v1884_v15 = vadd.f32 %v1883_v34, %v1812_v18 }
0x1c42   :  { %v1885_v59 = vpop.f32.mrf.mxu0 }
0x1c43   :  { %v1886_v45 = vadd.f32 %v1885_v59, %v1813_v23  ;;  %v1888_v39 = vmul.f32 0.5, %v1884_v15 }
0x1c45   :  { %2485 = vtanh.f32 %v1886_v45  ;;  %v1889_v12 = vmul.f32 0.5, %v1886_v45 }
0x1c46   :  { %2487 = vtanh.f32 %v1888_v39 }
0x1c52   :  { %v2486_v36 = vpop.eup %2485 }
0x1c53   :  { %1899 = vrot.lane.b32.xlu0 %v2486_v36, %s2610_s0  ;;  %v2488_v25 = vpop.eup %2487 }
0x1c54   :  { %v1892_v58 = vmul.f32 0.5, %v2488_v25 }
0x1c56   :  { %v1894_v47 = vadd.f32 0.5, %v1892_v58 }
0x1c58   :  { %v1897_v10 = vmul.f32 %v1894_v47, %v1805_v51 }
0x1cc5   :  { %v1900_v6 = vpop.permute.xlu0 %1899 }
0x1cc6   :  { %v1902_v8 = vmul.f32 %v1900_v6, %v1894_v47 }
0x1cc8   :  { %1904 = vrot.lane.b32.xlu1 %v1902_v8, %s2610_s0  ;;  %v3663_v8 = vsel %vm2881_vm10, %v3395_v49, %v3393_v41  ;;  %v2227_v41 = vld [vmem:[%s3649_s7 + $0x30] sm:$0xff]  ;;  %v2226_v49 = vld [vmem:[%s3649_s7 + $0x28] sm:$0xff] }
0x1d3a   :  { %v1905_v29 = vpop.permute.xlu1 %1904 }
0x1d3b   :  { %v1907_v18 = vadd.f32 %v1905_v29, %v1897_v10 }
0x1d3d   :  { %2489 = vtanh.f32 %v1907_v18 }
0x1d3e   :  { %2491 = vtanh.f32 %v1889_v12 }
0x1d4a   :  { %v2490_v54 = vpop.eup %2489 }
0x1d4b   :  { %1910 = vrot.lane.b32.xlu0 %v2490_v54, %s2610_s0  ;;  %v2492_v16 = vpop.eup %2491 }
0x1d4c   :  { %v1893_v23 = vmul.f32 0.5, %v2492_v16 }
0x1d4e   :  { %v1895_v5 = vadd.f32 0.5, %v1893_v23 }
0x1dbd   :  { %v1911_v17 = vpop.permute.xlu0 %1910 }
0x1dbe   :  { %v1913_v14 = vmul.f32 %v1911_v17, %v1895_v5 }
0x1dc0   :  { %2347 = vmatmul.mubr.msk.f32.vlgmr.msra.gmra.mxu1 %vm325_vm14, %v1913_v14 }
0x1dc1   :  { %2140 = vmatpush1.msra.mxu1 %v3224_v61  ;;  %2187 = vmatprep.mubr.f32.mxu1 %v2609_v1 }
0x1dc2   :  { %2141 = vmatprep.subr.mxu1 %v3227_v2 }
0x1dc3   :  { %2142 = vmatpush1.msra.mxu1 %v3232_v4 }
0x1dc4   :  { %2143 = vmatprep.subr.mxu1 %v3235_v24 }
0x1dc5   :  { %2144 = vmatpush1.msra.mxu1 %v3237_v35 }
0x1dc6   :  { %2145 = vmatprep.subr.mxu1 %v3240_v62 }
0x1dc7   :  { %2146 = vmatpush1.msra.mxu1 %v3244_v31 }
0x1dc8   :  { %2147 = vmatprep.subr.mxu1 %v3247_v38 }
0x1dc9   :  { %2148 = vmatpush1.msra.mxu1 %v3249_v50 }
0x1dca   :  { %2149 = vmatprep.subr.mxu1 %v3252_v0 }
0x1dcb   :  { %2150 = vmatpush1.msra.mxu1 %v3256_v44 }
0x1dcc   :  { %2151 = vmatprep.subr.mxu1 %v3259_v60 }
0x1dcd   :  { %2152 = vmatpush1.msra.mxu1 %v3261_v9 }
0x1dce   :  { %2153 = vmatprep.subr.mxu1 %v3264_v32 }
0x1dcf   :  { %2154 = vmatpush1.msra.mxu1 %v3268_v56 }
0x1e80   :  { %v1985_v61 = vpop.f32.mrf.mxu1 }
0x1e81   :  { %v1986_v2 = vadd.f32 %v1985_v61, %v1914_v28  ;;  %v2223_v61 = vld [vmem:[%s3649_s7 + $0x10] sm:$0xff] }
0x1e82   :  { %v1987_v4 = vpop.f32.mrf.mxu1 }
0x1e83   :  { %v1988_v24 = vadd.f32 %v1987_v4, %v1915_v43  ;;  %v1990_v62 = vmul.f32 0.5, %v1986_v2 }
0x1e85   :  { %2493 = vtanh.f32 %v1988_v24  ;;  %v1991_v19 = vmul.f32 0.5, %v1988_v24 }
0x1e86   :  { %2495 = vtanh.f32 %v1990_v62  ;;  %v2221_v62 = vld [vmem:[%s3649_s7] sm:$0xff] }
0x1e92   :  { %v2494_v35 = vpop.eup %2493 }
0x1e93   :  { %2001 = vrot.lane.b32.xlu1 %v2494_v35, %s2610_s0  ;;  %v2496_v31 = vpop.eup %2495  ;;  %v2222_v35 = vld [vmem:[%s3649_s7 + $0x8] sm:$0xff] }
0x1e94   :  { %v1994_v38 = vmul.f32 0.5, %v2496_v31 }
0x1e96   :  { %v1996_v50 = vadd.f32 0.5, %v1994_v38 }
0x1e98   :  { %v1999_v60 = vmul.f32 %v1996_v50, %v1907_v18  ;;  %v3664_v18 = vsel %vm2887_vm11, %v3411_v57, %v3405_v46  ;;  %v2225_v46 = vld [vmem:[%s3649_s7 + $0x20] sm:$0xff]  ;;  %v2224_v57 = vld [vmem:[%s3649_s7 + $0x18] sm:$0xff] }
0x1f05   :  { %v2002_v0 = vpop.permute.xlu1 %2001 }
0x1f06   :  { %v2004_v44 = vmul.f32 %v2002_v0, %v1996_v50 }
0x1f08   :  { %2006 = vrot.lane.b32.xlu0 %v2004_v44, %s2610_s0 }
0x1f7a   :  { %v2007_v9 = vpop.permute.xlu0 %2006 }
0x1f7b   :  { %v2009_v32 = vadd.f32 %v2007_v9, %v1999_v60 }
0x1f7d   :  { %2497 = vtanh.f32 %v2009_v32 }
0x1f7e   :  { %2499 = vtanh.f32 %v1991_v19 }
0x1f8a   :  { %v2498_v56 = vpop.eup %2497 }
0x1f8b   :  { %2012 = vrot.lane.b32.xlu1 %v2498_v56, %s2610_s0  ;;  %v2500_v7 = vpop.eup %2499  ;;  %v2350_v56 = vld [vmem:[#allocation4] ss:$0 sm:$0xff] }
0x1f8c   :  { %v1995_v21 = vmul.f32 0.5, %v2500_v7 }
0x1f8e   :  { %v1997_v40 = vadd.f32 0.5, %v1995_v21 }
0x1ffd   :  { %v2013_v28 = vpop.permute.xlu1 %2012 }
0x1ffe   :  { %v2015_v43 = vmul.f32 %v2013_v28, %v1997_v40 }
0x2000   :  { %2348 = vmatmul.mubr.msk.f32.vlgmr.msra.gmra.mxu0 %vm325_vm14, %v2015_v43 }
0x2001   :  { %2362 = vmatpush3.msra.mxu0 %v2228_v55  ;;  %2377 = vmatprep.mubr.msk.f32.mxu0 %vm2611_vm15, %v2609_v1 }
0x2002   :  { %2363 = vmatprep.subr.mxu0 %v2609_v1 }
0x2003   :  { %2364 = vmatpush3.msra.mxu0 %v2227_v41 }
0x2004   :  { %2365 = vmatprep.subr.mxu0 %v2609_v1 }
0x2005   :  { %2366 = vmatpush3.msra.mxu0 %v2226_v49 }
0x2006   :  { %2367 = vmatprep.subr.mxu0 %v2609_v1 }
0x2007   :  { %2368 = vmatpush3.msra.mxu0 %v2225_v46 }
0x2008   :  { %2369 = vmatprep.subr.mxu0 %v2609_v1 }
0x2009   :  { %2370 = vmatpush3.msra.mxu0 %v2224_v57 }
0x200a   :  { %2371 = vmatprep.subr.mxu0 %v2609_v1 }
0x200b   :  { %2372 = vmatpush3.msra.mxu0 %v2223_v61 }
0x200c   :  { %2373 = vmatprep.subr.mxu0 %v2609_v1 }
0x200d   :  { %2374 = vmatpush3.msra.mxu0 %v2222_v35 }
0x200e   :  { %2375 = vmatprep.subr.mxu0 %v2609_v1 }
0x200f   :  { %2376 = vmatpush3.msra.mxu0 %v2221_v62 }
0x20c0   :  { %v2087_v51 = vpop.f32.mrf.mxu0 }
0x20c1   :  { %v2088_v30 = vadd.f32 %v2087_v51, %v2016_v53 }
0x20c2   :  { %v2089_v22 = vpop.f32.mrf.mxu0 }
0x20c3   :  { %v2090_v3 = vadd.f32 %v2089_v22, %v3662_v26  ;;  %v2092_v20 = vmul.f32 0.5, %v2088_v30 }
0x20c5   :  { %2501 = vtanh.f32 %v2090_v3  ;;  %v2093_v48 = vmul.f32 0.5, %v2090_v3 }
0x20c6   :  { %2503 = vtanh.f32 %v2092_v20 }
0x20d2   :  { %v2502_v11 = vpop.eup %2501 }
0x20d3   :  { %2103 = vrot.lane.b32.xlu0 %v2502_v11, %s2610_s0  ;;  %v2504_v63 = vpop.eup %2503 }
0x20d4   :  { %v2096_v34 = vmul.f32 0.5, %v2504_v63 }
0x20d6   :  { %v2098_v15 = vadd.f32 0.5, %v2096_v34 }
0x20d8   :  { %v2101_v33 = vmul.f32 %v2098_v15, %v2009_v32 }
0x2145   :  { %v2104_v59 = vpop.permute.xlu0 %2103 }
0x2146   :  { %v2106_v45 = vmul.f32 %v2104_v59, %v2098_v15 }
0x2148   :  { %2108 = vrot.lane.b32.xlu1 %v2106_v45, %s2610_s0 }
0x21ba   :  { %v2109_v42 = vpop.permute.xlu1 %2108 }
0x21bb   :  { %v2111_v53 = vadd.f32 %v2109_v42, %v2101_v33 }
0x21bd   :  { %2505 = vtanh.f32 %v2111_v53 }
0x21be   :  { %2507 = vtanh.f32 %v2093_v48 }
0x21ca   :  { %v2506_v36 = vpop.eup %2505 }
0x21cb   :  { %2114 = vrot.lane.b32.xlu0 %v2506_v36, %s2610_s0  ;;  %v2508_v27 = vpop.eup %2507 }
0x21cc   :  { %v2097_v39 = vmul.f32 0.5, %v2508_v27 }
0x21ce   :  { %v2099_v25 = vadd.f32 0.5, %v2097_v39 }
0x223d   :  { %v2115_v58 = vpop.permute.xlu0 %2114 }
0x223e   :  { %v2117_v47 = vmul.f32 %v2115_v58, %v2099_v25 }
0x2240   :  { %2349 = vmatmul.mubr.msk.f32.vlgmr.msra.gmra.mxu1 %vm325_vm14, %v2117_v47 }
0x2300   :  { %v2189_v6 = vpop.f32.mrf.mxu1 }
0x2301   :  { %v2190_v10 = vadd.f32 %v2189_v6, %v3663_v8 }
0x2302   :  { %v2191_v29 = vpop.f32.mrf.mxu1 }
0x2303   :  { %v2192_v54 = vadd.f32 %v2191_v29, %v3664_v18  ;;  %v2194_v16 = vmul.f32 0.5, %v2190_v10 }
0x2305   :  { %2509 = vtanh.f32 %v2192_v54  ;;  %v2195_v38 = vmul.f32 0.5, %v2192_v54 }
0x2306   :  { %2511 = vtanh.f32 %v2194_v16 }
0x2312   :  { %v2510_v12 = vpop.eup %2509 }
0x2313   :  { %2205 = vrot.lane.b32.xlu1 %v2510_v12, %s2610_s0  ;;  %v2512_v23 = vpop.eup %2511 }
0x2314   :  { %v2198_v5 = vmul.f32 0.5, %v2512_v23 }
0x2316   :  { %v2200_v52 = vadd.f32 0.5, %v2198_v5 }
0x2318   :  { %v2203_v2 = vmul.f32 %v2200_v52, %v2111_v53 }
0x2385   :  { %v2206_v17 = vpop.permute.xlu1 %2205 }
0x2386   :  { %v2208_v14 = vmul.f32 %v2206_v17, %v2200_v52 }
0x2388   :  { %2210 = vrot.lane.b32.xlu0 %v2208_v14, %s2610_s0 }
0x23fa   :  { %v2211_v4 = vpop.permute.xlu0 %2210 }
0x23fb   :  { %v2213_v24 = vadd.f32 %v2211_v4, %v2203_v2 }
0x23fd   :  { %2513 = vtanh.f32 %v2213_v24 }
0x23fe   :  { %2515 = vtanh.f32 %v2195_v38 }
0x240a   :  { %v2514_v31 = vpop.eup %2513 }
0x240b   :  { %2216 = vrot.lane.b32.xlu1 %v2514_v31, %s2610_s0  ;;  %v2516_v50 = vpop.eup %2515 }
0x240c   :  { %v2199_v0 = vmul.f32 0.5, %v2516_v50 }
0x240e   :  { %v2201_v44 = vadd.f32 0.5, %v2199_v0 }
0x247d   :  { %v2217_v60 = vpop.permute.xlu1 %2216 }
0x247e   :  { %v2219_v9 = vmul.f32 %v2217_v60, %v2201_v44 }
0x2480   :  { %v2220_v32 = vsel %vm90_vm6, %v2219_v9, %v3428_v13 }
0x2481   :  { %2378 = vmatmul.mubr.msk.f32.vlgmr.msra.gmra.mxu0 %vm325_vm14, %v2220_v32 }
0x2541   :  { %v2305_v19 = vpop.f32.mrf.mxu0 }
0x2542   :  { %v2306_v1 = vadd.f32 %v2350_v56, %v2305_v19 }
0x2543   :  { %v2379_v7 = vpop.f32.mrf.mxu0 }
0x2544   :  { %2310 = vst.msk [vmem:[%s3651_s9] sm:$0xff] %vm2309_vm0, %v2306_v1 }
0x2545   :  { %2315 = vsyncpa [#allocation6], 1 }
0x2546   :  { %2316 = vsyncpa [#allocation8], 1 }
0x2547   :  { %2317 = vsyncpa [#allocation11], 1 }

</bundles_post_ra>
